<compile_context>
chip_gen: v6e
topology: v6e:2x2x1
jax: 0.10.0
libtpu: 0.0.40
codegen_flags: <defaults>
</compile_context>

<pallas_src>
import jax
import jax.numpy as jnp
from jax.experimental import pallas as pl
from jax.experimental.pallas import tpu as pltpu

EPS = 1e-5  # nn.BatchNorm2d default eps


# ----------------------------------------------------------------------------
# Fused Pallas kernel (one grid step == one batch element)
# ----------------------------------------------------------------------------

def _make_kernel(w, M):
    """Builds the fused kernel; w = feature-map width, M = h*w (flat pixels)."""
    f32 = jnp.float32
    bf16 = jnp.bfloat16

    def ahead(v, k):    # y[p] = v[(p + k) mod M]   (fetch from larger indices)
        return pltpu.roll(v, (M - k) % M, axis=1)

    def behind(v, k):   # y[p] = v[(p - k) mod M]   (fetch from smaller indices)
        return pltpu.roll(v, k % M, axis=1)

    def box_fwd(v):     # y[p] = sum_{s,t in [0,8)} v[p + s*w + t]   (8x8 window)
        v = v + ahead(v, 1)
        v = v + ahead(v, 2)
        v = v + ahead(v, 4)
        v = v + ahead(v, w)
        v = v + ahead(v, 2 * w)
        v = v + ahead(v, 4 * w)
        return v

    def box_bwd(v):     # y[p] = sum_{s,t in [0,8)} v[p - s*w - t]   (fold / overlap-add)
        v = v + behind(v, 1)
        v = v + behind(v, 2)
        v = v + behind(v, 4)
        v = v + behind(v, w)
        v = v + behind(v, 2 * w)
        v = v + behind(v, 4 * w)
        return v

    def kernel(x_ref, wf_ref, sh2_ref, wseg_ref, scal_ref,
               wc1p_ref, sh1_ref, wc2_ref, valid_ref, out_ref):
        x = x_ref[0]                                                  # (192, M) bf16

        # --- EncoderDecoder (stub enc + conv3 | relu(bn(conv2))) fused --------
        z = jnp.dot(wf_ref[...], x, preferred_element_type=f32) + sh2_ref[...]
        counting = z[0:64, :]                                         # counting branch
        softmask = jnp.maximum(z[64:128, :], 0.0)                     # segmentation branch

        # --- segmenter: 1x1 conv 64->1 as a VPU*XLU reduce + exact sigmoid ----
        s_lin = (jnp.sum(wseg_ref[...] * softmask, axis=0, keepdims=True)
                 + scal_ref[0:1, :])                                  # (1, M)
        seg = 1.0 / (1.0 + jnp.exp(-s_lin))

        # --- featuremap = counting_branch * segmentation_branch ---------------
        fm = counting * seg                                           # (64, M) f32

        # --- Counter.conv1 (bn1 scale & 1/64 avg folded) + channel-mean row ---
        combo = jnp.dot(wc1p_ref[...], fm.astype(bf16),
                        preferred_element_type=f32)                   # (72, M)
        t1 = combo[0:64, :]                                           # scaled conv1(fm)
        sm = jnp.exp(combo[64:65, :])                                 # exp(mean_c fm)

        # --- 8x8 box sums (AvgPool2d(8,1) / conv2d(sm, ones 8x8)) via rolls ---
        t2 = box_fwd(t1)                                              # (64, M)
        sc = box_fwd(sm)                                              # (1, M)

        a1 = jnp.maximum(t2 + sh1_ref[...], 0.0)                      # relu(bn1(pool(.)))
        c_lin = jnp.sum(wc2_ref[...] * a1, axis=0, keepdims=True)     # conv2 (64->1)*bn2
        c_map = jnp.maximum(c_lin + scal_ref[1:2, :], 0.0)            # relu(bn2(.)) (1, M)

        # --- dynamic_unfolding: R = sm * fold_valid(C / sc) --------------------
        t_row = c_map * pl.reciprocal(jnp.maximum(sc, 1e-30), approx=True)
        overlap = box_bwd(t_row * valid_ref[...])                     # overlap-add (fold)
        r_row = sm * overlap

        # Single lane-dense (3, M) output slab: rows = [seg, C, R].
        out_ref[:, 0:1, :] = seg[None]
        out_ref[:, 1:2, :] = c_map[None]
        out_ref[:, 2:3, :] = r_row[None]

    return kernel


# ----------------------------------------------------------------------------
# Host-side parameter init (matches V3seg.weight_init) and operand preparation
# ----------------------------------------------------------------------------

def init_params(key):
    """Matches weight_init: conv ~ N(0, 0.01), bias = 0, BN gamma=1/beta=0."""
    ks = jax.random.split(key, 7)

    def conv_w(k, cin, cout):
        return 0.01 * jax.random.normal(k, (cin, cout), dtype=jnp.float32)

    def bn_scale(n):
        return jnp.full((n,), 1.0 / jnp.sqrt(1.0 + EPS), dtype=jnp.float32)

    def bn_shift(n):
        return jnp.zeros((n,), jnp.float32)

    z = lambda n: jnp.zeros((n,), jnp.float32)
    return {
        # encoder-decoder stub projections (stand-ins for MixNet/ASPP/CARAFE)
        "w_stub56": conv_w(ks[0], 3, 56), "b_stub56": z(56),
        "w_stub64": conv_w(ks[1], 3, 64), "b_stub64": z(64),
        # EncoderDecoder.conv3 (56 -> 64), counting branch
        "w_conv3": conv_w(ks[2], 56, 64), "b_conv3": z(64),
        # EncoderDecoder.conv2 (64 -> 64) + bn
        "w_conv2": conv_w(ks[3], 64, 64), "b_conv2": z(64),
        "bn_scale": bn_scale(64), "bn_shift": bn_shift(64),
        # segmenter.conv (64 -> 1)
        "w_seg": conv_w(ks[4], 64, 1), "b_seg": z(1),
        # Counter: conv1 (64 -> 64) + bn1, conv2 (64 -> 1) + bn2
        "w_cnt1": conv_w(ks[5], 64, 64), "b_cnt1": z(64),
        "bn1_scale": bn_scale(64), "bn1_shift": bn_shift(64),
        "w_cnt2": conv_w(ks[6], 64, 1), "b_cnt2": z(1),
        "bn2_scale": bn_scale(1), "bn2_shift": bn_shift(1),
    }


def _im2col_pool8(x):
    """x: (B, C, H, W) -> (B, C*64, h*w); row = c*64 + s*8 + t, col = i*w + j."""
    B, C, H, W = x.shape
    h, w = H // 8, W // 8
    x = x.reshape(B, C, h, 8, w, 8)
    x = jnp.transpose(x, (0, 1, 3, 5, 2, 4))            # (B, C, 8, 8, h, w)
    return x.reshape(B, C * 64, h * w)


def _build_operands(params, h, w):
    f32, bf16 = jnp.float32, jnp.bfloat16
    M = h * w

    # --- stage 1 (stub projections, 1/64 avg-pool folded) ---------------------
    w56t = params["w_stub56"].T                                      # (56, 3)
    w64t = params["w_stub64"].T                                      # (64, 3)
    w1 = jnp.concatenate(
        [jnp.repeat(w56t, 64, axis=1), jnp.repeat(w64t, 64, axis=1),
         jnp.zeros((8, 3 * 64), f32)], axis=0) / 64.0                # (128, 192)
    b_stub = jnp.concatenate(
        [params["b_stub56"], params["b_stub64"], jnp.zeros((8,), f32)])

    # --- stage 2: block-diagonal [conv3 | conv2]; BN + biases folded ----------
    w2 = jnp.zeros((128, 128), f32)
    w2 = w2.at[0:64, 0:56].set(params["w_conv3"].T)
    w2 = w2.at[64:128, 56:120].set(params["w_conv2"].T)
    sc2 = jnp.concatenate([jnp.ones((64,), f32), params["bn_scale"]])
    sh2 = jnp.concatenate(
        [params["b_conv3"],
         params["b_conv2"] * params["bn_scale"] + params["bn_shift"]])
    sh2 = sh2 + sc2 * (w2 @ b_stub)            # fold (zero) stub biases through
    w_fused = (sc2[:, None] * w2) @ w1         # pre-multiplied stage-1/2 weight

    # --- Counter.conv1 (+bn1 scale, /64 avg) stacked with channel-mean row ----
    wc1 = params["w_cnt1"].T * (params["bn1_scale"] / 64.0)[:, None]  # (64, 64)
    wc1p = jnp.concatenate(
        [wc1, jnp.full((1, 64), 1.0 / 64.0, f32), jnp.zeros((7, 64), f32)],
        axis=0)                                                       # (72, 64)
    sh1 = (params["b_cnt1"] * params["bn1_scale"]
           + params["bn1_shift"]).reshape(64, 1)

    # --- Counter.conv2 (+bn2 scale) as a column for the VPU reduce ------------
    wc2_col = params["w_cnt2"] * params["bn2_scale"][0]               # (64, 1)
    c2t = (params["b_cnt2"][0] * params["bn2_scale"][0]
           + params["bn2_shift"][0])

    # --- segmenter column + merged scalar operand [b_seg, c2t] ----------------
    wseg_col = params["w_seg"]                                        # (64, 1)
    scal = jnp.stack([params["b_seg"][0], c2t]).reshape(2, 1).astype(f32)

    # --- valid-anchor mask (8x8 window fits inside the map) -------------------
    idx = jnp.arange(M)
    pi, pj = idx // w, idx % w
    valid = ((pi <= h - 8) & (pj <= w - 8)).astype(f32).reshape(1, M)

    return dict(
        w_fused=w_fused.astype(bf16), sh2=sh2.reshape(128, 1),
        wseg=wseg_col.astype(f32), scal=scal,
        wc1p=wc1p.astype(bf16), sh1=sh1,
        wc2=wc2_col.astype(f32), valid=valid)


# ----------------------------------------------------------------------------
# Forward pass (NCHW in, NCHW out, like the PyTorch module)
# ----------------------------------------------------------------------------

def v3seg_forward(params, x_nchw):
    B, Cin, H, W = x_nchw.shape
    assert H % 8 == 0 and W % 8 == 0 and H >= 64 and W >= 64
    h, w = H // 8, W // 8
    M = h * w
    # Roll-based box sums keep the flat pixel axis lane-resident.
    assert M % 128 == 0, "flat feature map (H/8)*(W/8) must be a multiple of 128"

    ops = _build_operands(params, h, w)
    x_cols = _im2col_pool8(x_nchw).astype(jnp.bfloat16)               # (B, 192, M)

    kernel = _make_kernel(w, M)

    def full_spec(shape):
        return pl.BlockSpec(shape, lambda b, _n=len(shape): (0,) * _n)

    out = pl.pallas_call(
        kernel,
        grid=(B,),
        in_specs=[
            pl.BlockSpec((1, Cin * 64, M), lambda b: (b, 0, 0)),      # x (im2col)
            full_spec((128, Cin * 64)),                               # w_fused
            full_spec((128, 1)),                                      # sh2
            full_spec((64, 1)),                                       # wseg
            full_spec((2, 1)),                                        # [b_seg, c2t]
            full_spec((72, 64)),                                      # wc1 + mean row
            full_spec((64, 1)),                                       # sh1
            full_spec((64, 1)),                                       # wc2 * bn2_scale
            full_spec((1, M)),                                        # valid anchors
        ],
        out_specs=pl.BlockSpec((1, 3, M), lambda b: (b, 0, 0)),
        out_shape=jax.ShapeDtypeStruct((B, 3, M), jnp.float32),
        compiler_params=pltpu.CompilerParams(
            dimension_semantics=("parallel",)),
    )(x_cols, ops["w_fused"], ops["sh2"], ops["wseg"], ops["scal"],
      ops["wc1p"], ops["sh1"], ops["wc2"], ops["valid"])

    segmentation = out[:, 0, :].reshape(B, 1, h, w)
    R = out[:, 2, :].reshape(B, 1, h, w)
    C = out[:, 1, :].reshape(B, h, w)[:, : h - 7, : w - 7][:, None, :, :]
    return {"C": C, "R": R, "segmentation": segmentation}


# ----------------------------------------------------------------------------
# Main
# ----------------------------------------------------------------------------

if __name__ == "__main__":
    key = jax.random.PRNGKey(0)
    pkey, xkey = jax.random.split(key)
    params = init_params(pkey)

    # Small input: B=2, 3 channels, 128x128 -> 1/8-res feature maps of 16x16.
    x = jax.random.normal(xkey, (2, 3, 128, 128), dtype=jnp.float32)

    out = jax.jit(v3seg_forward)(params, x)
    out = jax.block_until_ready(out)

    assert out["C"].shape == (2, 1, 9, 9)
    assert out["R"].shape == (2, 1, 16, 16)
    assert out["segmentation"].shape == (2, 1, 16, 16)
    assert all(bool(jnp.all(jnp.isfinite(v))) for v in out.values())

    print("KERNEL_OK")
</pallas_src>

<mosaic_0001>
module attributes {stable_mosaic.version = 11 : i64} {
  func.func @kernel(%arg0: i32, %arg1: memref<1x192x256xbf16, #tpu.memory_space<vmem>>, %arg2: memref<128x192xbf16, #tpu.memory_space<vmem>>, %arg3: memref<128x1xf32, #tpu.memory_space<vmem>>, %arg4: memref<64x1xf32, #tpu.memory_space<vmem>>, %arg5: memref<2x1xf32, #tpu.memory_space<vmem>>, %arg6: memref<72x64xbf16, #tpu.memory_space<vmem>>, %arg7: memref<64x1xf32, #tpu.memory_space<vmem>>, %arg8: memref<64x1xf32, #tpu.memory_space<vmem>>, %arg9: memref<1x256xf32, #tpu.memory_space<vmem>>, %arg10: memref<1x3x256xf32, #tpu.memory_space<vmem>>) attributes {dimension_semantics = [#tpu.dimension_semantics<parallel>], iteration_bounds = array<i64: 2>, scalar_prefetch = 0 : i64, scratch_operands = 0 : i64, tpu.core_type = #tpu.core_type<tc>, window_params = [{transform_indices = @transform_0, window_bounds = array<i64: 1, 192, 256>}, {pipeline_mode = #tpu.pipeline_mode<synchronous>, transform_indices = @transform_1, window_bounds = array<i64: 128, 192>}, {pipeline_mode = #tpu.pipeline_mode<synchronous>, transform_indices = @transform_2, window_bounds = array<i64: 128, 1>}, {pipeline_mode = #tpu.pipeline_mode<synchronous>, transform_indices = @transform_3, window_bounds = array<i64: 64, 1>}, {pipeline_mode = #tpu.pipeline_mode<synchronous>, transform_indices = @transform_4, window_bounds = array<i64: 2, 1>}, {pipeline_mode = #tpu.pipeline_mode<synchronous>, transform_indices = @transform_5, window_bounds = array<i64: 72, 64>}, {pipeline_mode = #tpu.pipeline_mode<synchronous>, transform_indices = @transform_6, window_bounds = array<i64: 64, 1>}, {pipeline_mode = #tpu.pipeline_mode<synchronous>, transform_indices = @transform_7, window_bounds = array<i64: 64, 1>}, {pipeline_mode = #tpu.pipeline_mode<synchronous>, transform_indices = @transform_8, window_bounds = array<i64: 1, 256>}, {transform_indices = @transform_9, window_bounds = array<i64: 1, 3, 256>}]} {
    %c0 = arith.constant 0 : index
    %c0_0 = arith.constant 0 : index
    %c0_1 = arith.constant 0 : index
    %0 = vector.load %arg1[%c0, %c0_0, %c0_1] : memref<1x192x256xbf16, #tpu.memory_space<vmem>>, vector<1x192x256xbf16>
    %1 = vector.shape_cast %0 : vector<1x192x256xbf16> to vector<192x256xbf16>
    %c0_2 = arith.constant 0 : index
    %c0_3 = arith.constant 0 : index
    %2 = vector.load %arg2[%c0_2, %c0_3] : memref<128x192xbf16, #tpu.memory_space<vmem>>, vector<128x192xbf16>
    %cst = arith.constant dense<0.000000e+00> : vector<128x256xf32>
    %3 = tpu.matmul %2, %1, %cst {dimension_numbers = #tpu.dot_dimension_numbers<[1], [0], [0], [1], [0, 0, 1, 1], [], []>} : vector<128x192xbf16>, vector<192x256xbf16>, vector<128x256xf32> -> vector<128x256xf32>
    %c0_4 = arith.constant 0 : index
    %c0_5 = arith.constant 0 : index
    %4 = vector.load %arg3[%c0_4, %c0_5] : memref<128x1xf32, #tpu.memory_space<vmem>>, vector<128x1xf32>
    %5 = vector.broadcast %4 : vector<128x1xf32> to vector<128x256xf32>
    %6 = arith.addf %3, %5 : vector<128x256xf32>
    %7 = vector.extract_strided_slice %6 {offsets = [0, 0], sizes = [64, 256], strides = [1, 1]} : vector<128x256xf32> to vector<64x256xf32>
    %8 = vector.extract_strided_slice %6 {offsets = [64, 0], sizes = [64, 256], strides = [1, 1]} : vector<128x256xf32> to vector<64x256xf32>
    %cst_6 = arith.constant 0.000000e+00 : f32
    %9 = vector.broadcast %cst_6 : f32 to vector<64x256xf32>
    %10 = arith.maximumf %8, %9 : vector<64x256xf32>
    %c0_7 = arith.constant 0 : index
    %c0_8 = arith.constant 0 : index
    %11 = vector.load %arg4[%c0_7, %c0_8] : memref<64x1xf32, #tpu.memory_space<vmem>>, vector<64x1xf32>
    %12 = vector.broadcast %11 : vector<64x1xf32> to vector<64x256xf32>
    %13 = arith.mulf %12, %10 : vector<64x256xf32>
    %cst_9 = arith.constant dense<0.000000e+00> : vector<256xf32>
    %14 = vector.multi_reduction <add>, %13, %cst_9 [0] : vector<64x256xf32> to vector<256xf32>
    %15 = vector.shape_cast %14 : vector<256xf32> to vector<1x256xf32>
    %c0_10 = arith.constant 0 : index
    %c0_11 = arith.constant 0 : index
    %16 = vector.load %arg5[%c0_10, %c0_11] : memref<2x1xf32, #tpu.memory_space<vmem>>, vector<1x1xf32>
    %17 = vector.broadcast %16 : vector<1x1xf32> to vector<1x256xf32>
    %18 = arith.addf %15, %17 : vector<1x256xf32>
    %cst_12 = arith.constant 0.000000e+00 : f32
    %19 = vector.broadcast %cst_12 : f32 to vector<1x256xf32>
    %20 = arith.subf %19, %18 : vector<1x256xf32>
    %21 = math.exp %20 : vector<1x256xf32>
    %cst_13 = arith.constant 1.000000e+00 : f32
    %22 = vector.broadcast %cst_13 : f32 to vector<1x256xf32>
    %23 = arith.addf %22, %21 : vector<1x256xf32>
    %cst_14 = arith.constant 1.000000e+00 : f32
    %24 = vector.broadcast %cst_14 : f32 to vector<1x256xf32>
    %25 = arith.divf %24, %23 : vector<1x256xf32>
    %26 = vector.broadcast %25 : vector<1x256xf32> to vector<64x256xf32>
    %27 = arith.mulf %7, %26 : vector<64x256xf32>
    %c0_15 = arith.constant 0 : index
    %c0_16 = arith.constant 0 : index
    %28 = vector.load %arg6[%c0_15, %c0_16] : memref<72x64xbf16, #tpu.memory_space<vmem>>, vector<72x64xbf16>
    %29 = arith.truncf %27 : vector<64x256xf32> to vector<64x256xbf16>
    %cst_17 = arith.constant dense<0.000000e+00> : vector<72x256xf32>
    %30 = tpu.matmul %28, %29, %cst_17 {dimension_numbers = #tpu.dot_dimension_numbers<[1], [0], [0], [1], [0, 0, 1, 1], [], []>} : vector<72x64xbf16>, vector<64x256xbf16>, vector<72x256xf32> -> vector<72x256xf32>
    %31 = vector.extract_strided_slice %30 {offsets = [0, 0], sizes = [64, 256], strides = [1, 1]} : vector<72x256xf32> to vector<64x256xf32>
    %32 = vector.extract_strided_slice %30 {offsets = [64, 0], sizes = [1, 256], strides = [1, 1]} : vector<72x256xf32> to vector<1x256xf32>
    %33 = math.exp %32 : vector<1x256xf32>
    %c255_i32 = arith.constant 255 : i32
    %34 = tpu.dynamic_rotate %31 by %c255_i32 dim 1 : vector<64x256xf32>, i32 -> vector<64x256xf32>
    %35 = arith.addf %31, %34 : vector<64x256xf32>
    %c254_i32 = arith.constant 254 : i32
    %36 = tpu.dynamic_rotate %35 by %c254_i32 dim 1 : vector<64x256xf32>, i32 -> vector<64x256xf32>
    %37 = arith.addf %35, %36 : vector<64x256xf32>
    %c252_i32 = arith.constant 252 : i32
    %38 = tpu.dynamic_rotate %37 by %c252_i32 dim 1 : vector<64x256xf32>, i32 -> vector<64x256xf32>
    %39 = arith.addf %37, %38 : vector<64x256xf32>
    %c240_i32 = arith.constant 240 : i32
    %40 = tpu.dynamic_rotate %39 by %c240_i32 dim 1 : vector<64x256xf32>, i32 -> vector<64x256xf32>
    %41 = arith.addf %39, %40 : vector<64x256xf32>
    %c224_i32 = arith.constant 224 : i32
    %42 = tpu.dynamic_rotate %41 by %c224_i32 dim 1 : vector<64x256xf32>, i32 -> vector<64x256xf32>
    %43 = arith.addf %41, %42 : vector<64x256xf32>
    %c192_i32 = arith.constant 192 : i32
    %44 = tpu.dynamic_rotate %43 by %c192_i32 dim 1 : vector<64x256xf32>, i32 -> vector<64x256xf32>
    %45 = arith.addf %43, %44 : vector<64x256xf32>
    %c255_i32_18 = arith.constant 255 : i32
    %46 = tpu.dynamic_rotate %33 by %c255_i32_18 dim 1 : vector<1x256xf32>, i32 -> vector<1x256xf32>
    %47 = arith.addf %33, %46 : vector<1x256xf32>
    %c254_i32_19 = arith.constant 254 : i32
    %48 = tpu.dynamic_rotate %47 by %c254_i32_19 dim 1 : vector<1x256xf32>, i32 -> vector<1x256xf32>
    %49 = arith.addf %47, %48 : vector<1x256xf32>
    %c252_i32_20 = arith.constant 252 : i32
    %50 = tpu.dynamic_rotate %49 by %c252_i32_20 dim 1 : vector<1x256xf32>, i32 -> vector<1x256xf32>
    %51 = arith.addf %49, %50 : vector<1x256xf32>
    %c240_i32_21 = arith.constant 240 : i32
    %52 = tpu.dynamic_rotate %51 by %c240_i32_21 dim 1 : vector<1x256xf32>, i32 -> vector<1x256xf32>
    %53 = arith.addf %51, %52 : vector<1x256xf32>
    %c224_i32_22 = arith.constant 224 : i32
    %54 = tpu.dynamic_rotate %53 by %c224_i32_22 dim 1 : vector<1x256xf32>, i32 -> vector<1x256xf32>
    %55 = arith.addf %53, %54 : vector<1x256xf32>
    %c192_i32_23 = arith.constant 192 : i32
    %56 = tpu.dynamic_rotate %55 by %c192_i32_23 dim 1 : vector<1x256xf32>, i32 -> vector<1x256xf32>
    %57 = arith.addf %55, %56 : vector<1x256xf32>
    %c0_24 = arith.constant 0 : index
    %c0_25 = arith.constant 0 : index
    %58 = vector.load %arg7[%c0_24, %c0_25] : memref<64x1xf32, #tpu.memory_space<vmem>>, vector<64x1xf32>
    %59 = vector.broadcast %58 : vector<64x1xf32> to vector<64x256xf32>
    %60 = arith.addf %45, %59 : vector<64x256xf32>
    %cst_26 = arith.constant 0.000000e+00 : f32
    %61 = vector.broadcast %cst_26 : f32 to vector<64x256xf32>
    %62 = arith.maximumf %60, %61 : vector<64x256xf32>
    %c0_27 = arith.constant 0 : index
    %c0_28 = arith.constant 0 : index
    %63 = vector.load %arg8[%c0_27, %c0_28] : memref<64x1xf32, #tpu.memory_space<vmem>>, vector<64x1xf32>
    %64 = vector.broadcast %63 : vector<64x1xf32> to vector<64x256xf32>
    %65 = arith.mulf %64, %62 : vector<64x256xf32>
    %cst_29 = arith.constant dense<0.000000e+00> : vector<256xf32>
    %66 = vector.multi_reduction <add>, %65, %cst_29 [0] : vector<64x256xf32> to vector<256xf32>
    %67 = vector.shape_cast %66 : vector<256xf32> to vector<1x256xf32>
    %c1 = arith.constant 1 : index
    %c0_30 = arith.constant 0 : index
    %68 = vector.load %arg5[%c1, %c0_30] : memref<2x1xf32, #tpu.memory_space<vmem>>, vector<1x1xf32>
    %69 = vector.broadcast %68 : vector<1x1xf32> to vector<1x256xf32>
    %70 = arith.addf %67, %69 : vector<1x256xf32>
    %cst_31 = arith.constant 0.000000e+00 : f32
    %71 = vector.broadcast %cst_31 : f32 to vector<1x256xf32>
    %72 = arith.maximumf %70, %71 : vector<1x256xf32>
    %cst_32 = arith.constant 1.000000e-30 : f32
    %73 = vector.broadcast %cst_32 : f32 to vector<1x256xf32>
    %74 = arith.maximumf %57, %73 : vector<1x256xf32>
    %75 = tpu.reciprocal %74 {approx = true} : vector<1x256xf32> -> vector<1x256xf32>
    %76 = arith.mulf %72, %75 : vector<1x256xf32>
    %c0_33 = arith.constant 0 : index
    %c0_34 = arith.constant 0 : index
    %77 = vector.load %arg9[%c0_33, %c0_34] : memref<1x256xf32, #tpu.memory_space<vmem>>, vector<1x256xf32>
    %78 = arith.mulf %76, %77 : vector<1x256xf32>
    %c1_i32 = arith.constant 1 : i32
    %79 = tpu.dynamic_rotate %78 by %c1_i32 dim 1 : vector<1x256xf32>, i32 -> vector<1x256xf32>
    %80 = arith.addf %78, %79 : vector<1x256xf32>
    %c2_i32 = arith.constant 2 : i32
    %81 = tpu.dynamic_rotate %80 by %c2_i32 dim 1 : vector<1x256xf32>, i32 -> vector<1x256xf32>
    %82 = arith.addf %80, %81 : vector<1x256xf32>
    %c4_i32 = arith.constant 4 : i32
    %83 = tpu.dynamic_rotate %82 by %c4_i32 dim 1 : vector<1x256xf32>, i32 -> vector<1x256xf32>
    %84 = arith.addf %82, %83 : vector<1x256xf32>
    %c16_i32 = arith.constant 16 : i32
    %85 = tpu.dynamic_rotate %84 by %c16_i32 dim 1 : vector<1x256xf32>, i32 -> vector<1x256xf32>
    %86 = arith.addf %84, %85 : vector<1x256xf32>
    %c32_i32 = arith.constant 32 : i32
    %87 = tpu.dynamic_rotate %86 by %c32_i32 dim 1 : vector<1x256xf32>, i32 -> vector<1x256xf32>
    %88 = arith.addf %86, %87 : vector<1x256xf32>
    %c64_i32 = arith.constant 64 : i32
    %89 = tpu.dynamic_rotate %88 by %c64_i32 dim 1 : vector<1x256xf32>, i32 -> vector<1x256xf32>
    %90 = arith.addf %88, %89 : vector<1x256xf32>
    %91 = arith.mulf %33, %90 : vector<1x256xf32>
    %92 = vector.shape_cast %25 : vector<1x256xf32> to vector<1x1x256xf32>
    %c0_35 = arith.constant 0 : index
    %c0_36 = arith.constant 0 : index
    %c0_37 = arith.constant 0 : index
    %93 = vector.load %arg10[%c0_35, %c0_36, %c0_37] : memref<1x3x256xf32, #tpu.memory_space<vmem>>, vector<1x1x256xf32>
    tpu.vector_store %arg10[%c0_35, %c0_36, %c0_37], %92 {strides = array<i32>} : memref<1x3x256xf32, #tpu.memory_space<vmem>>, vector<1x1x256xf32>,
    %94 = vector.shape_cast %72 : vector<1x256xf32> to vector<1x1x256xf32>
    %c0_38 = arith.constant 0 : index
    %c1_39 = arith.constant 1 : index
    %c0_40 = arith.constant 0 : index
    %95 = vector.load %arg10[%c0_38, %c1_39, %c0_40] : memref<1x3x256xf32, #tpu.memory_space<vmem>>, vector<1x1x256xf32>
    tpu.vector_store %arg10[%c0_38, %c1_39, %c0_40], %94 {strides = array<i32>} : memref<1x3x256xf32, #tpu.memory_space<vmem>>, vector<1x1x256xf32>,
    %96 = vector.shape_cast %91 : vector<1x256xf32> to vector<1x1x256xf32>
    %c0_41 = arith.constant 0 : index
    %c2 = arith.constant 2 : index
    %c0_42 = arith.constant 0 : index
    %97 = vector.load %arg10[%c0_41, %c2, %c0_42] : memref<1x3x256xf32, #tpu.memory_space<vmem>>, vector<1x1x256xf32>
    tpu.vector_store %arg10[%c0_41, %c2, %c0_42], %96 {strides = array<i32>} : memref<1x3x256xf32, #tpu.memory_space<vmem>>, vector<1x1x256xf32>,
    return
  }
  func.func @transform_0(%arg0: i32) -> (i32, i32, i32) {
    %c0_i32 = arith.constant 0 : i32
    %c0_i32_0 = arith.constant 0 : i32
    %c0_i32_1 = arith.constant 0 : i32
    return %arg0, %c0_i32, %c0_i32_0 : i32, i32, i32
  }
  func.func @transform_1(%arg0: i32) -> (i32, i32) {
    %c0_i32 = arith.constant 0 : i32
    %c0_i32_0 = arith.constant 0 : i32
    %c0_i32_1 = arith.constant 0 : i32
    return %c0_i32, %c0_i32_0 : i32, i32
  }
  func.func @transform_2(%arg0: i32) -> (i32, i32) {
    %c0_i32 = arith.constant 0 : i32
    %c0_i32_0 = arith.constant 0 : i32
    %c0_i32_1 = arith.constant 0 : i32
    return %c0_i32, %c0_i32_0 : i32, i32
  }
  func.func @transform_3(%arg0: i32) -> (i32, i32) {
    %c0_i32 = arith.constant 0 : i32
    %c0_i32_0 = arith.constant 0 : i32
    %c0_i32_1 = arith.constant 0 : i32
    return %c0_i32, %c0_i32_0 : i32, i32
  }
  func.func @transform_4(%arg0: i32) -> (i32, i32) {
    %c0_i32 = arith.constant 0 : i32
    %c0_i32_0 = arith.constant 0 : i32
    %c0_i32_1 = arith.constant 0 : i32
    return %c0_i32, %c0_i32_0 : i32, i32
  }
  func.func @transform_5(%arg0: i32) -> (i32, i32) {
    %c0_i32 = arith.constant 0 : i32
    %c0_i32_0 = arith.constant 0 : i32
    %c0_i32_1 = arith.constant 0 : i32
    return %c0_i32, %c0_i32_0 : i32, i32
  }
  func.func @transform_6(%arg0: i32) -> (i32, i32) {
    %c0_i32 = arith.constant 0 : i32
    %c0_i32_0 = arith.constant 0 : i32
    %c0_i32_1 = arith.constant 0 : i32
    return %c0_i32, %c0_i32_0 : i32, i32
  }
  func.func @transform_7(%arg0: i32) -> (i32, i32) {
    %c0_i32 = arith.constant 0 : i32
    %c0_i32_0 = arith.constant 0 : i32
    %c0_i32_1 = arith.constant 0 : i32
    return %c0_i32, %c0_i32_0 : i32, i32
  }
  func.func @transform_8(%arg0: i32) -> (i32, i32) {
    %c0_i32 = arith.constant 0 : i32
    %c0_i32_0 = arith.constant 0 : i32
    %c0_i32_1 = arith.constant 0 : i32
    return %c0_i32, %c0_i32_0 : i32, i32
  }
  func.func @transform_9(%arg0: i32) -> (i32, i32, i32) {
    %c0_i32 = arith.constant 0 : i32
    %c0_i32_0 = arith.constant 0 : i32
    %c0_i32_1 = arith.constant 0 : i32
    return %arg0, %c0_i32, %c0_i32_0 : i32, i32, i32
  }
}

</mosaic_0001>

<bundles_post_ra>
// kernel: squeeze.13
= control target key start
LH: loop header
LB: loop body
LE: loop exit
PB: predicated region body
PF: predicated region fallthrough
CT: control target
= control target key end

     0   :  { %vm12_vm0 = vcmask 130048   ;;  %s78_s10 = smov 80   ;;  %s79_s15 = smov 96   ;;  %s136_s0 = inlined_call_operand.vmem [shape: f32[2,256], index: 0, kind: input, shape index: {}]   ;;  %s137_s1 = inlined_call_operand.vmem [shape: f32[2,16,16], index: 1, kind: output, shape index: {}]  }
   0x1   :  { %v61_v0 = vld [vmem:[%s136_s0 + $0x2] sm:$0x3]  ;;  %v9_v1 = vld [vmem:[%s136_s0] sm:$0x3]  ;;  %s77_s0 = smov 112   ;;  %s80_s16 = smov 64  }
   0x2   :  { %8 = vst [vmem:[#allocation0 + $0x8] sm:$0x3] %v61_v0  ;;  %10 = vst [vmem:[#allocation0] sm:$0x3] %v9_v1  ;;  %s81_s17 = smov 48   ;;  %s82_s18 = smov 32  }
   0x3   :  { %s83_s19 = smov 16  }
   0x9   :  { %v19_v2 = vld.sshfl [vmem:[#allocation0] sm:$0xff pattern:$0x99999180]  }
   0xa   :  { %v11_v3 = vld [vmem:[#allocation0] sm:$0x3]   ;;  %20 = vrot.lane.b32.xlu0 %v19_v2, %s77_s0  ;;  %32 = vrot.lane.b32.xlu1 %v19_v2, %s78_s10  ;;  %v15_v4 = vld [vmem:[#allocation0 + $0x8] sm:$0x3]  }
   0xb   :  { %13 = vst.msk [vmem:[%s137_s1] ss:$16 sm:$0x3] %vm12_vm0, %v11_v3   ;;  %62 = vst.msk [vmem:[%s137_s1 + $0x8] ss:$16 sm:$0x3] %vm12_vm0, %v15_v4  }
   0xe   :  { %26 = vrot.lane.b32.xlu0 %v19_v2, %s79_s15  ;;  %38 = vrot.lane.b32.xlu1 %v19_v2, %s80_s16 }
  0x12   :  { %44 = vrot.lane.b32.xlu0 %v19_v2, %s81_s17  ;;  %50 = vrot.lane.b32.xlu1 %v19_v2, %s82_s18 }
  0x16   :  { %56 = vrot.lane.b32.xlu0 %v19_v2, %s83_s19 }
  0x7c   :  { %v21_v5 = vpop.permute.xlu0 %20   ;;  %v33_v6 = vpop.permute.xlu1 %32  }
  0x7d   :  { %63 = vst.msk [vmem:[%s137_s1 + $0x1] ss:$8 sm:$0xf] %vm12_vm0, %v21_v5   ;;  %65 = vst.msk [vmem:[%s137_s1 + $0x3] ss:$8 sm:$0xf] %vm12_vm0, %v33_v6  }
  0x80   :  { %v27_v7 = vpop.permute.xlu0 %26   ;;  %v39_v8 = vpop.permute.xlu1 %38  }
  0x81   :  { %64 = vst.msk [vmem:[%s137_s1 + $0x2] ss:$8 sm:$0xf] %vm12_vm0, %v27_v7   ;;  %66 = vst.msk [vmem:[%s137_s1 + $0x4] ss:$8 sm:$0xf] %vm12_vm0, %v39_v8  }
  0x84   :  { %v45_v9 = vpop.permute.xlu0 %44   ;;  %v51_v10 = vpop.permute.xlu1 %50  }
  0x85   :  { %67 = vst.msk [vmem:[%s137_s1 + $0x5] ss:$8 sm:$0xf] %vm12_vm0, %v45_v9   ;;  %68 = vst.msk [vmem:[%s137_s1 + $0x6] ss:$8 sm:$0xf] %vm12_vm0, %v51_v10  }
  0x88   :  { %v57_v11 = vpop.permute.xlu0 %56  }
  0x89   :  { %69 = vst.msk [vmem:[%s137_s1 + $0x7] ss:$8 sm:$0xf] %vm12_vm0, %v57_v11  }

// kernel: squeeze.12
= control target key start
LH: loop header
LB: loop body
LE: loop exit
PB: predicated region body
PF: predicated region fallthrough
CT: control target
= control target key end

     0   :  { %s139_s0 = inlined_call_operand.vmem [shape: f32[2,256], index: 0, kind: input, shape index: {}]   ;;  %s140_s1 = inlined_call_operand.hbm [shape: f32[2,1,16,16], index: 1, kind: output, shape index: {}]  }
   0x1   :  { %v72_v0 = vld [vmem:[%s139_s0 + $0x2] sm:$0x3]  ;;  %v10_v1 = vld [vmem:[%s139_s0] sm:$0x3] }
   0x2   :  { %9 = vst [vmem:[#allocation2 + $0x8] sm:$0x3] %v72_v0  ;;  %11 = vst [vmem:[#allocation2] sm:$0x3] %v10_v1 }
   0x3   :  { %2 = vsyncpa [#allocation1], 0  ;;  %vm13_vm0 = vcmask 130048   ;;  %s103_s0 = smov 112   ;;  %s104_s10 = smov 80  }
   0x4   :  { %s105_s11 = smov 96   ;;  %s106_s12 = smov 64  }
   0x5   :  { %s107_s13 = smov 48   ;;  %s108_s14 = smov 32  }
   0x6   :  { %s109_s15 = smov 16   ;;  %s110_s16 = smov [#allocation0]  }
   0x7   :  { %s66_s17 = sshll.u32 %s110_s16, 4  ;;  %s67_s17 = int_to_ptr.vmem [resolvable:$true] %s66_s17 }
   0x8   :  { %s81_s18 = scalar_lea.vmem %s67_s17, 512  ;;  %p86_p1 = scmp.lt.s32.totalorder %s67_s17, %s67_s17 }
   0x9   :  { %v20_v2 = vld.sshfl [vmem:[#allocation2] sm:$0xff pattern:$0x99999180]   ;;  %p82_p0 = scmp.ne.s32.totalorder %s67_s17, %s81_s18  ;;  %p87_p2 = scmp.lt.s32.totalorder %s81_s18, %s81_s18 }
   0xa   :  { %v12_v3 = vld [vmem:[#allocation2] sm:$0x3]   ;;  %21 = vrot.lane.b32.xlu0 %v20_v2, %s103_s0  ;;  %33 = vrot.lane.b32.xlu1 %v20_v2, %s104_s10  ;;  %v16_v4 = vld [vmem:[#allocation2 + $0x8] sm:$0x3]  }
   0xb   :  { %14 = vst.msk [vmem:[#allocation0] ss:$16 sm:$0x3] %vm13_vm0, %v12_v3   ;;  %19 = vst.msk [vmem:[#allocation0 + $0x8] ss:$16 sm:$0x3] %vm13_vm0, %v16_v4   ;;  %p88_p3 = por %p87_p2, %p86_p1 }
   0xd   :  { %p89_p4 = pnand %p88_p3, %p82_p0 }
   0xe   :  { %27 = vrot.lane.b32.xlu0 %v20_v2, %s105_s11  ;;  %39 = vrot.lane.b32.xlu1 %v20_v2, %s106_s12 }
  0x12   :  { %45 = vrot.lane.b32.xlu0 %v20_v2, %s107_s13  ;;  %51 = vrot.lane.b32.xlu1 %v20_v2, %s108_s14 }
  0x16   :  { %57 = vrot.lane.b32.xlu0 %v20_v2, %s109_s15 }
  0x7c   :  { %v22_v5 = vpop.permute.xlu0 %21   ;;  %v34_v6 = vpop.permute.xlu1 %33  }
  0x7d   :  { %25 = vst.msk [vmem:[#allocation0 + $0x1] ss:$8 sm:$0xf] %vm13_vm0, %v22_v5   ;;  %37 = vst.msk [vmem:[#allocation0 + $0x3] ss:$8 sm:$0xf] %vm13_vm0, %v34_v6  }
  0x80   :  { %v28_v7 = vpop.permute.xlu0 %27   ;;  %v40_v8 = vpop.permute.xlu1 %39  }
  0x81   :  { %31 = vst.msk [vmem:[#allocation0 + $0x2] ss:$8 sm:$0xf] %vm13_vm0, %v28_v7   ;;  %43 = vst.msk [vmem:[#allocation0 + $0x4] ss:$8 sm:$0xf] %vm13_vm0, %v40_v8  }
  0x84   :  { %v46_v9 = vpop.permute.xlu0 %45   ;;  %v52_v10 = vpop.permute.xlu1 %51  }
  0x85   :  { %49 = vst.msk [vmem:[#allocation0 + $0x5] ss:$8 sm:$0xf] %vm13_vm0, %v46_v9   ;;  %55 = vst.msk [vmem:[#allocation0 + $0x6] ss:$8 sm:$0xf] %vm13_vm0, %v52_v10  }
  0x88   :  { %v58_v11 = vpop.permute.xlu0 %57  }
  0x89   :  { %61 = vst.msk [vmem:[#allocation0 + $0x7] ss:$8 sm:$0xf] %vm13_vm0, %v58_v11  }
  0x8a   :  { %92 = shalt.err (!%p89_p4)
}
  0x8b   :  { %69 = dma.vmem_to_hbm [thread:$0]  %s67_s17, 512, %s140_s1, [#allocation1]  }
  0x8c   :  { %101 = dma.done.wait [#allocation1], 512  }
  0x8d   :  { %102 = vsyncadd [#allocation1], 4294966784 }
  0x8e   :  { %71 = vsyncpa [#allocation1], 1 }

// kernel: v3seg_forward.1
= control target key start
LH: loop header
LB: loop body
LE: loop exit
PB: predicated region body
PF: predicated region fallthrough
CT: control target
= control target key end

     0   :  { %s2150_s30 = smov 0   ;;  %s3302_s0 = inlined_call_operand.vmem [shape: bf16[2,192,256], index: 0, kind: input, shape index: {}]   ;;  %s3303_s1 = inlined_call_operand.vmem [shape: bf16[128,192], index: 1, kind: input, shape index: {}]   ;;  %s3304_s2 = inlined_call_operand.vmem [shape: f32[128,1], index: 2, kind: input, shape index: {}]   ;;  %s3305_s3 = inlined_call_operand.vmem [shape: f32[64,1], index: 3, kind: input, shape index: {}]   ;;  %s3306_s4 = inlined_call_operand.vmem [shape: f32[2,1], index: 4, kind: input, shape index: {}]   ;;  %s3307_s5 = inlined_call_operand.vmem [shape: bf16[72,64], index: 5, kind: input, shape index: {}]   ;;  %s3308_s6 = inlined_call_operand.vmem [shape: f32[64,1], index: 6, kind: input, shape index: {}]   ;;  %s3309_s7 = inlined_call_operand.vmem [shape: f32[64,1], index: 7, kind: input, shape index: {}]   ;;  %s3310_s8 = inlined_call_operand.vmem [shape: f32[1,256], index: 8, kind: input, shape index: {}]   ;;  %s3311_s9 = inlined_call_operand.vmem [shape: f32[2,3,256], index: 9, kind: output, shape index: {}]  }
   0x1 LB: > { %s1903_s10 = sadd.s32 4294967295, %s2085_s30   ;;  %p1907_p0 = scmp.ge.s32.totalorder %s2085_s30, 1  ;;  %s2085_s30 = sphi %s2150_s30, %s19_s30  }
   0x2   : > { %p287_p1 = scmp.lt.s32.totalorder %s2085_s30, 3 }
   0x4   : > { %p288_p2 = pnand %p1907_p0, %p287_p1 }
   0x5   : > { %p323_p3 = scmp.lt.s32.totalorder (!%p288_p2), %s1903_s10, 1  ;;  %s2089_s16 = smov (!%p288_p2), 127  }
   0x6   : > { %291 = sbr.rel (%p288_p2) target bundleno = 2105 (0x839), region = 56  ;;  %s2090_s17 = smov (!%p288_p2), 126  }
   0x7   : > { %s2091_s18 = smov (!%p288_p2), 124   ;;  %s2092_s19 = smov (!%p288_p2), 112  }
   0x8   : > { %s2094_s11 = smov (!%p288_p2), 64   ;;  %s2095_s21 = smov (!%p288_p2), 1  }
   0x9   : > { %s2096_s22 = smov (!%p288_p2), 2   ;;  %s2098_s24 = smov (!%p288_p2), 16  }
   0xb   : > { %vm662_vm0 = vcmask 523264   ;;  %v2036_v0 = vld [vmem:[%s3303_s1 + $0x4] ss:$8 sps:$4 sm:$0xff]   ;;  %s3315_s10 = smov (!%p323_p3, %s1903_s10), 1  ;;  %v2087_v1 = vmov 0   ;;  %v384_v2 = vld [vmem:[%s3304_s2 + $0x50] sm:$0xff] }
   0xc   : > { %1997 = vset.pattern.permute.xlu1 %v2087_v1  ;;  %1996 = vset.pattern.permute.xlu0 %v2087_v1  ;;  %s1974_s13 = smul.u32 192, %s3315_s10  ;;  %v382_v3 = vld [vmem:[%s3304_s2 + $0x40] sm:$0xff]  ;;  %v385_v4 = vld [vmem:[%s3304_s2 + $0x58] sm:$0xff]  ;;  %v383_v5 = vld [vmem:[%s3304_s2 + $0x48] sm:$0xff]  ;;  %s1973_s23 = sshll.u32 %s3315_s10, 3 }
   0xd   : > { %1951 = vmatprep.mubr.msk.bf16.mxu0 %vm662_vm0, %v2036_v0  ;;  %1037 = vmatprep.mubr.bf16.mxu1 %v2087_v1  ;;  %v817_v17 = vld [vmem:[%s3305_s3 + $0x8] sm:$0xff]  ;;  %v816_v18 = vld [vmem:[%s3305_s3] sm:$0xff]  ;;  %v818_v20 = vld [vmem:[%s3305_s3 + $0x10] sm:$0xff]  ;;  %s2388_s25 = scalar_lea.vmem %s3311_s9, %s1973_s23  ;;  %s2097_s23 = smov 4  }
   0xe   : > { %s2177_s20 = scalar_lea.vmem %s3302_s0, %s1974_s13  ;;  %442 = vperm.xlu1 %1997, %v384_v2   ;;  %432 = vperm.xlu0 %1996, %v382_v3   ;;  %v386_v21 = vld [vmem:[%s3304_s2 + $0x60] sm:$0xff]  ;;  %v819_v24 = vld [vmem:[%s3305_s3 + $0x18] sm:$0xff]  ;;  %v387_v25 = vld [vmem:[%s3304_s2 + $0x68] sm:$0xff] }
   0xf   : > { %v1998_v6 = vld [vmem:[%s2177_s20 + $0x74] ss:$8 sps:$4 sm:$0xff]   ;;  %v2000_v7 = vld [vmem:[%s2177_s20 + $0x70] ss:$8 sps:$4 sm:$0xff]   ;;  %v2001_v8 = vld [vmem:[%s2177_s20 + $0x64] ss:$8 sps:$4 sm:$0xff]  }
  0x10   : > { %687 = vmatprep.subr.bf16.mxu0 %v1998_v6  ;;  %v2003_v9 = vld [vmem:[%s2177_s20 + $0x60] ss:$8 sps:$4 sm:$0xff]   ;;  %v2004_v10 = vld [vmem:[%s2177_s20 + $0x54] ss:$8 sps:$4 sm:$0xff]   ;;  %v2006_v11 = vld [vmem:[%s2177_s20 + $0x50] ss:$8 sps:$4 sm:$0xff]  }
  0x11   : > { %688 = vmatpush1.bf16.msra.mxu0 %v2000_v7  ;;  %v2007_v12 = vld [vmem:[%s2177_s20 + $0x44] ss:$8 sps:$4 sm:$0xff]   ;;  %v2009_v13 = vld [vmem:[%s2177_s20 + $0x40] ss:$8 sps:$4 sm:$0xff]   ;;  %v2010_v14 = vld [vmem:[%s2177_s20 + $0x34] ss:$8 sps:$4 sm:$0xff]  }
  0x12   : > { %447 = vperm.xlu1 %1997, %v385_v4   ;;  %689 = vmatprep.subr.bf16.mxu0 %v2001_v8  ;;  %v2012_v15 = vld [vmem:[%s2177_s20 + $0x30] ss:$8 sps:$4 sm:$0xff]   ;;  %v2013_v16 = vld [vmem:[%s2177_s20 + $0x24] ss:$8 sps:$4 sm:$0xff]   ;;  %v2015_v19 = vld [vmem:[%s2177_s20 + $0x20] ss:$8 sps:$4 sm:$0xff]  }
  0x13   : > { %437 = vperm.xlu0 %1996, %v383_v5   ;;  %v2016_v22 = vld [vmem:[%s2177_s20 + $0x14] ss:$8 sps:$4 sm:$0xff]   ;;  %v2018_v23 = vld [vmem:[%s2177_s20 + $0x10] ss:$8 sps:$4 sm:$0xff]   ;;  %v2019_v26 = vld [vmem:[%s2177_s20 + $0x4] ss:$8 sps:$4 sm:$0xff]  }
  0x14   : > { %v2021_v27 = vld [vmem:[%s2177_s20] ss:$8 sps:$4 sm:$0xff]   ;;  %v2022_v28 = vld [vmem:[%s2177_s20 + $0xb4] ss:$8 sps:$4 sm:$0xff]   ;;  %v2024_v31 = vld [vmem:[%s2177_s20 + $0xb0] ss:$8 sps:$4 sm:$0xff]  }
  0x15   : > { %690 = vmatpush1.bf16.msra.mxu0 %v2003_v9  ;;  %v820_v29 = vld [vmem:[%s3305_s3 + $0x20] sm:$0xff]  ;;  %v388_v30 = vld [vmem:[%s3304_s2 + $0x70] sm:$0xff]  ;;  %v821_v32 = vld [vmem:[%s3305_s3 + $0x28] sm:$0xff] }
  0x16   : > { %691 = vmatprep.subr.bf16.mxu0 %v2004_v10  ;;  %831 = vperm.xlu1 %1997, %v817_v17   ;;  %v389_v33 = vld [vmem:[%s3304_s2 + $0x78] sm:$0xff]  ;;  %v2025_v34 = vld [vmem:[%s2177_s20 + $0xa4] ss:$8 sps:$4 sm:$0xff]   ;;  %v2027_v35 = vld [vmem:[%s2177_s20 + $0xa0] ss:$8 sps:$4 sm:$0xff]  }
  0x17   : > { %826 = vperm.xlu0 %1996, %v816_v18   ;;  %v823_v36 = vld [vmem:[%s3305_s3 + $0x38] sm:$0xff]  ;;  %v822_v37 = vld [vmem:[%s3305_s3 + $0x30] sm:$0xff]  ;;  %v906_v40 = vld [vmem:[%s3306_s4] sm:$0x1] }
  0x18   : > { %v2028_v38 = vld [vmem:[%s2177_s20 + $0x94] ss:$8 sps:$4 sm:$0xff]   ;;  %v2030_v39 = vld [vmem:[%s2177_s20 + $0x90] ss:$8 sps:$4 sm:$0xff]   ;;  %v2031_v42 = vld [vmem:[%s2177_s20 + $0x84] ss:$8 sps:$4 sm:$0xff]  }
  0x19   : > { %692 = vmatpush1.bf16.msra.mxu0 %v2006_v11  ;;  %v380_v41 = vld [vmem:[%s3304_s2 + $0x30] sm:$0xff]  ;;  %v2033_v43 = vld [vmem:[%s2177_s20 + $0x80] ss:$8 sps:$4 sm:$0xff]   ;;  %v381_v44 = vld [vmem:[%s3304_s2 + $0x38] sm:$0xff]  ;;  %s2093_s20 = smov 96  }
  0x1a   : > { %693 = vmatprep.subr.bf16.mxu0 %v2007_v12  ;;  %836 = vperm.xlu1 %1997, %v818_v20   ;;  %v378_v45 = vld [vmem:[%s3304_s2 + $0x20] sm:$0xff]  ;;  %v2037_v47 = vld [vmem:[%s3303_s1 + $0x14] ss:$8 sps:$4 sm:$0xff]   ;;  %v379_v48 = vld [vmem:[%s3304_s2 + $0x28] sm:$0xff] }
  0x1b   : > { %452 = vperm.xlu0 %1996, %v386_v21   ;;  %v2034_v46 = vld [vmem:[%s3303_s1] ss:$8 sps:$4 sm:$0xff]   ;;  %v376_v49 = vld [vmem:[%s3304_s2 + $0x10] sm:$0xff]  ;;  %v377_v50 = vld [vmem:[%s3304_s2 + $0x18] sm:$0xff] }
  0x1c   : > { %v374_v51 = vld [vmem:[%s3304_s2] sm:$0xff]  ;;  %v2039_v52 = vld [vmem:[%s3303_s1 + $0x10] ss:$8 sps:$4 sm:$0xff]   ;;  %v375_v54 = vld [vmem:[%s3304_s2 + $0x8] sm:$0xff] }
  0x1d   : > { %694 = vmatpush1.bf16.msra.mxu0 %v2009_v13  ;;  %v2040_v53 = vld [vmem:[%s3303_s1 + $0x24] ss:$8 sps:$4 sm:$0xff]   ;;  %v2042_v55 = vld [vmem:[%s3303_s1 + $0x20] ss:$8 sps:$4 sm:$0xff]   ;;  %v2043_v56 = vld [vmem:[%s3303_s1 + $0x34] ss:$8 sps:$4 sm:$0xff]  }
  0x1e   : > { %695 = vmatprep.subr.bf16.mxu0 %v2010_v14  ;;  %841 = vperm.xlu1 %1997, %v819_v24   ;;  %v2045_v57 = vld [vmem:[%s3303_s1 + $0x30] ss:$8 sps:$4 sm:$0xff]   ;;  %v2046_v58 = vld [vmem:[%s3303_s1 + $0x44] ss:$8 sps:$4 sm:$0xff]   ;;  %v2048_v59 = vld [vmem:[%s3303_s1 + $0x40] ss:$8 sps:$4 sm:$0xff]  }
  0x1f   : > { %457 = vperm.xlu0 %1996, %v387_v25   ;;  %v2049_v60 = vld [vmem:[%s3303_s1 + $0x54] ss:$8 sps:$4 sm:$0xff]   ;;  %v2051_v61 = vld [vmem:[%s3303_s1 + $0x50] ss:$8 sps:$4 sm:$0xff]   ;;  %v2052_v62 = vld [vmem:[%s3303_s1 + $0x64] ss:$8 sps:$4 sm:$0xff]  }
  0x20   : > { %v2054_v63 = vld [vmem:[%s3303_s1 + $0x60] ss:$8 sps:$4 sm:$0xff]   ;;  %v2055_v0 = vld [vmem:[%s3303_s1 + $0x74] ss:$8 sps:$4 sm:$0xff]   ;;  %v2057_v2 = vld [vmem:[%s3303_s1 + $0x70] ss:$8 sps:$4 sm:$0xff]  }
  0x21   : > { %696 = vmatpush1.bf16.msra.mxu0 %v2012_v15 }
  0x22   : > { %697 = vmatprep.subr.bf16.mxu0 %v2013_v16  ;;  %846 = vperm.xlu1 %1997, %v820_v29  }
  0x23   : > { %462 = vperm.xlu0 %1996, %v388_v30  }
  0x25   : > { %698 = vmatpush1.bf16.msra.mxu0 %v2015_v19 }
  0x26   : > { %699 = vmatprep.subr.bf16.mxu0 %v2016_v22  ;;  %851 = vperm.xlu1 %1997, %v821_v32  }
  0x27   : > { %467 = vperm.xlu0 %1996, %v389_v33  }
  0x29   : > { %700 = vmatpush1.bf16.msra.mxu0 %v2018_v23 }
  0x2a   : > { %701 = vmatprep.subr.bf16.mxu0 %v2019_v26  ;;  %861 = vperm.xlu1 %1997, %v823_v36  }
  0x2b   : > { %856 = vperm.xlu0 %1996, %v822_v37  }
  0x2d   : > { %702 = vmatpush1.bf16.msra.mxu0 %v2021_v27 }
  0x2e   : > { %711 = vmatprep.subr.bf16.mxu0 %v2022_v28  ;;  %422 = vperm.xlu1 %1997, %v380_v41  }
  0x2f   : > { %909 = vperm.xlu0 %1996, %v906_v40  }
  0x31   : > { %712 = vmatpush2.bf16.msra.mxu0 %v2024_v31 }
  0x32   : > { %713 = vmatprep.subr.bf16.mxu0 %v2025_v34  ;;  %412 = vperm.xlu1 %1997, %v378_v45  }
  0x33   : > { %427 = vperm.xlu0 %1996, %v381_v44  }
  0x35   : > { %714 = vmatpush2.bf16.msra.mxu0 %v2027_v35 }
  0x36   : > { %715 = vmatprep.subr.bf16.mxu0 %v2028_v38  ;;  %402 = vperm.xlu1 %1997, %v376_v49  }
  0x37   : > { %417 = vperm.xlu0 %1996, %v379_v48  }
  0x39   : > { %716 = vmatpush2.bf16.msra.mxu0 %v2030_v39 }
  0x3a   : > { %717 = vmatprep.subr.bf16.mxu0 %v2031_v42  ;;  %392 = vperm.xlu1 %1997, %v374_v51  }
  0x3b   : > { %407 = vperm.xlu0 %1996, %v377_v50  }
  0x3d   : > { %718 = vmatpush2.bf16.msra.mxu0 %v2033_v43 }
  0x3f   : > { %397 = vperm.xlu0 %1996, %v375_v54  }
  0x40   : > { %720 = vmatmul.mubr.bf16.vlgmr.msra.gmra.mxu0 %v2034_v46 }
  0x41   : > { %1952 = vmatprep.mubr.msk.bf16.mxu0 %vm662_vm0, %v2037_v47 }
  0x48   : > { %730 = vmatmul.mubr.bf16.gmra.mxu0 %v2039_v52 }
  0x49   : > { %1953 = vmatprep.mubr.msk.bf16.mxu0 %vm662_vm0, %v2040_v53 }
  0x50   : > { %740 = vmatmul.mubr.bf16.gmra.mxu0 %v2042_v55 }
  0x51   : > { %1954 = vmatprep.mubr.msk.bf16.mxu0 %vm662_vm0, %v2043_v56 }
  0x58   : > { %750 = vmatmul.mubr.bf16.gmra.mxu0 %v2045_v57 }
  0x59   : > { %1955 = vmatprep.mubr.msk.bf16.mxu0 %vm662_vm0, %v2046_v58 }
  0x60   : > { %760 = vmatmul.mubr.bf16.gmra.mxu0 %v2048_v59 }
  0x61   : > { %1956 = vmatprep.mubr.msk.bf16.mxu0 %vm662_vm0, %v2049_v60 }
  0x68   : > { %770 = vmatmul.mubr.bf16.gmra.mxu0 %v2051_v61 }
  0x69   : > { %1957 = vmatprep.mubr.msk.bf16.mxu0 %vm662_vm0, %v2052_v62 }
  0x70   : > { %780 = vmatmul.mubr.bf16.gmra.mxu0 %v2054_v63 }
  0x71   : > { %1958 = vmatprep.mubr.msk.bf16.mxu0 %vm662_vm0, %v2055_v0 }
  0x78   : > { %790 = vmatmul.mubr.bf16.gmra.mxu0 %v2057_v2 }
  0x89   : > { %v433_v12 = vpop.permute.xlu0 %432  ;;  %v443_v15 = vpop.permute.xlu1 %442 }
  0x8d   : > { %v448_v20 = vpop.permute.xlu1 %447 }
  0x8e   : > { %v438_v17 = vpop.permute.xlu0 %437 }
  0x91   : > { %v832_v25 = vpop.permute.xlu1 %831 }
  0x92   : > { %v827_v22 = vpop.permute.xlu0 %826 }
  0x95   : > { %v837_v30 = vpop.permute.xlu1 %836 }
  0x96   : > { %v453_v27 = vpop.permute.xlu0 %452 }
  0x99   : > { %v842_v40 = vpop.permute.xlu1 %841 }
  0x9a   : > { %v458_v32 = vpop.permute.xlu0 %457 }
  0x9d   : > { %v847_v59 = vpop.permute.xlu1 %846 }
  0x9e   : > { %v463_v46 = vpop.permute.xlu0 %462 }
 0x100   : > { %v2324_v3 = vpop.f32.mrf.mxu0 }
 0x102   : > { %v2326_v4 = vpop.f32.mrf.mxu0 }
 0x104   : > { %v2328_v5 = vpop.f32.mrf.mxu0 }
 0x106   : > { %v2330_v6 = vpop.f32.mrf.mxu0 }
 0x108   : > { %v2332_v7 = vpop.f32.mrf.mxu0 }
 0x10a   : > { %v2334_v8 = vpop.f32.mrf.mxu0 }
 0x10c   : > { %v2336_v9 = vpop.f32.mrf.mxu0 }
 0x10e   : > { %v2338_v10 = vpop.f32.mrf.mxu0 }
 0x110   : > { %v2340_v11 = vpop.f32.mrf.mxu0 }
 0x112   : > { %v2342_v13 = vpop.f32.mrf.mxu0 }
 0x114   : > { %v2344_v14 = vpop.f32.mrf.mxu0 }
 0x116   : > { %v2346_v16 = vpop.f32.mrf.mxu0 }
 0x118   : > { %v2348_v18 = vpop.f32.mrf.mxu0 }
 0x11a   : > { %v2350_v19 = vpop.f32.mrf.mxu0 }
 0x11c   : > { %v2352_v21 = vpop.f32.mrf.mxu0 }
 0x11e   : > { %v2354_v23 = vpop.f32.mrf.mxu0 }
 0x120   : > { %v761_v24 = vpop.f32.mrf.mxu0 }
 0x121   : > { %v762_v35 = vadd.f32 %v761_v24, %v433_v12 }
 0x122   : > { %v763_v26 = vpop.f32.mrf.mxu0 }
 0x123   : > { %v764_v39 = vadd.f32 %v763_v26, %v433_v12  ;;  %v800_v45 = vmax.f32 %v762_v35, 0.0 }
 0x124   : > { %v765_v28 = vpop.f32.mrf.mxu0 }
 0x125   : > { %v766_v33 = vadd.f32 %v765_v28, %v438_v17  ;;  %v801_v51 = vmax.f32 %v764_v39, 0.0  ;;  %v864_v57 = vmul.f32 %v827_v22, %v800_v45 }
 0x126   : > { %v767_v29 = vpop.f32.mrf.mxu0 }
 0x127   : > { %v768_v36 = vadd.f32 %v767_v29, %v438_v17  ;;  %v802_v41 = vmax.f32 %v766_v33, 0.0  ;;  %v865_v2 = vmul.f32 %v827_v22, %v801_v51 }
 0x128   : > { %v771_v31 = vpop.f32.mrf.mxu0 }
 0x129   : > { %v772_v37 = vadd.f32 %v771_v31, %v443_v15  ;;  %v803_v47 = vmax.f32 %v768_v36, 0.0  ;;  %v866_v53 = vmul.f32 %v832_v25, %v802_v41 }
 0x12a   : > { %v773_v34 = vpop.f32.mrf.mxu0 }
 0x12b   : > { %v774_v42 = vadd.f32 %v773_v34, %v443_v15  ;;  %v804_v48 = vmax.f32 %v772_v37, 0.0  ;;  %v867_v60 = vmul.f32 %v832_v25, %v803_v47  ;;  %v468_v15 = vpop.permute.xlu0 %467  ;;  %v880_v17 = vadd.f32 %v866_v53, %v864_v57 }
 0x12c   : > { %v775_v38 = vpop.f32.mrf.mxu0 }
 0x12d   : > { %v776_v43 = vadd.f32 %v775_v38, %v448_v20  ;;  %v805_v54 = vmax.f32 %v774_v42, 0.0  ;;  %v868_v61 = vmul.f32 %v837_v30, %v804_v48  ;;  %v893_v33 = vadd.f32 %v867_v60, %v865_v2  ;;  %v852_v38 = vpop.permute.xlu1 %851 }
 0x12e   : > { %v777_v44 = vpop.f32.mrf.mxu0 }
 0x12f   : > { %v778_v49 = vadd.f32 %v777_v44, %v448_v20  ;;  %v806_v55 = vmax.f32 %v776_v43, 0.0  ;;  %v869_v20 = vmul.f32 %v837_v30, %v805_v54  ;;  %v881_v34 = vadd.f32 %v880_v17, %v868_v61  ;;  %v857_v45 = vpop.permute.xlu0 %856 }
 0x130   : > { %v781_v50 = vpop.f32.mrf.mxu0 }
 0x131   : > { %v782_v52 = vadd.f32 %v781_v50, %v453_v27  ;;  %v807_v62 = vmax.f32 %v778_v49, 0.0  ;;  %v870_v24 = vmul.f32 %v842_v40, %v806_v55  ;;  %v894_v39 = vadd.f32 %v893_v33, %v869_v20 }
 0x132   : > { %v783_v56 = vpop.f32.mrf.mxu0 }
 0x133   : > { %v784_v58 = vadd.f32 %v783_v56, %v453_v27  ;;  %v808_v63 = vmax.f32 %v782_v52, 0.0  ;;  %v871_v35 = vmul.f32 %v842_v40, %v807_v62  ;;  %v882_v41 = vadd.f32 %v881_v34, %v870_v24 }
 0x134   : > { %v785_v0 = vpop.f32.mrf.mxu0 }
 0x135   : > { %v786_v12 = vadd.f32 %v785_v0, %v458_v32  ;;  %v809_v26 = vmax.f32 %v784_v58, 0.0  ;;  %v872_v27 = vmul.f32 %v847_v59, %v808_v63  ;;  %v895_v47 = vadd.f32 %v894_v39, %v871_v35  ;;  %v862_v58 = vpop.permute.xlu1 %861  ;;  %v910_v35 = vpop.permute.xlu0 %909 }
 0x136   : > { %v787_v28 = vpop.f32.mrf.mxu0 }
 0x137   : > { %v810_v29 = vmax.f32 %v786_v12, 0.0  ;;  %v788_v31 = vadd.f32 %v787_v28, %v458_v32  ;;  %v873_v22 = vmul.f32 %v847_v59, %v809_v26  ;;  %v883_v48 = vadd.f32 %v882_v41, %v872_v27 }
 0x138   : > { %v791_v36 = vpop.f32.mrf.mxu0 }
 0x139   : > { %v811_v25 = vmax.f32 %v788_v31, 0.0  ;;  %v792_v37 = vadd.f32 %v791_v36, %v463_v46  ;;  %v874_v43 = vmul.f32 %v852_v38, %v810_v29  ;;  %v896_v52 = vadd.f32 %v895_v47, %v873_v22  ;;  %v423_v22 = vpop.permute.xlu1 %422 }
 0x13a   : > { %v793_v42 = vpop.f32.mrf.mxu0 }
 0x13b   : > { %v812_v44 = vmax.f32 %v792_v37, 0.0  ;;  %v794_v30 = vadd.f32 %v793_v42, %v463_v46  ;;  %v875_v32 = vmul.f32 %v852_v38, %v811_v25  ;;  %v884_v54 = vadd.f32 %v883_v48, %v874_v43  ;;  %v428_v42 = vpop.permute.xlu0 %427 }
 0x13c   : > { %v795_v49 = vpop.f32.mrf.mxu0 }
 0x13d   : > { %v876_v50 = vmul.f32 %v857_v45, %v812_v44  ;;  %v813_v51 = vmax.f32 %v794_v30, 0.0  ;;  %v796_v40 = vadd.f32 %v795_v49, %v468_v15  ;;  %v897_v59 = vadd.f32 %v896_v52, %v875_v32  ;;  %v413_v43 = vpop.permute.xlu1 %412 }
 0x13e   : > { %v797_v53 = vpop.f32.mrf.mxu0  ;;  %v926_v32 = vlaneseq }
 0x13f   : > { %v877_v55 = vmul.f32 %v857_v45, %v813_v51  ;;  %v814_v56 = vmax.f32 %v796_v40, 0.0  ;;  %v798_v57 = vadd.f32 %v797_v53, %v468_v15  ;;  %v885_v60 = vadd.f32 %v884_v54, %v876_v50  ;;  %v418_v30 = vpop.permute.xlu0 %417 }
 0x140   : > { %v2088_v51 = vmov 1966171168   ;;  %v2357_v52 = vshrl.u32 %v926_v32, 7  ;;  %vm2391_vm1 = vcmp.lt.s32.totalorder %v926_v32, 256 }
 0x141   : > { %v878_v61 = vmul.f32 %v862_v58, %v814_v56  ;;  %v815_v62 = vmax.f32 %v798_v57, 0.0  ;;  %v898_v46 = vadd.f32 %v897_v59, %v877_v55  ;;  %v403_v49 = vpop.permute.xlu1 %402  ;;  %v1789_v40 = vunpack.c.l.s4 %v2088_v51 }
 0x142   : > { %v2360_v56 = vsub.s32 0, %v2357_v52 }
 0x143   : > { %v886_v63 = vadd.f32 %v885_v60, %v878_v61  ;;  %v879_v0 = vmul.f32 %v862_v58, %v815_v62  ;;  %v408_v50 = vpop.permute.xlu0 %407  ;;  %v1790_v53 = vunpack.c.0.s8 %v1789_v40  ;;  %v732_v62 = vadd.f32 %v2332_v7, %v403_v49 }
 0x144   : > { %v746_v7 = vadd.f32 %v2344_v14, %v418_v30 }
 0x145   : > { %v887_v2 = vrot.slane %v886_v63, 4  ;;  %v899_v12 = vadd.f32 %v898_v46, %v879_v0  ;;  %v393_v54 = vpop.permute.xlu1 %392  ;;  %v2364_v58 = vsub.s32 %v1790_v53, %v2357_v52  ;;  %v736_v0 = vadd.f32 %v2336_v9, %v408_v50 }
 0x146   : > { %v722_v57 = vadd.f32 %v2324_v3, %v393_v54  ;;  %v724_v59 = vadd.f32 %v2326_v4, %v393_v54  ;;  %v742_v3 = vadd.f32 %v2340_v11, %v413_v43  ;;  %v756_v4 = vadd.f32 %v2352_v21, %v428_v42 }
 0x147   : > { %v888_v17 = vadd.f32 %v887_v2, %v886_v63  ;;  %v900_v20 = vrot.slane %v899_v12, 4  ;;  %v398_v55 = vpop.permute.xlu0 %397  ;;  %v734_v63 = vadd.f32 %v2334_v8, %v403_v49  ;;  %v738_v2 = vadd.f32 %v2338_v10, %v408_v50  ;;  %v2062_v49 = vld [vmem:[%s3307_s5 + $0x20] ss:$0 sps:$4 sm:$0xff]  }
 0x148   : > { %v726_v60 = vadd.f32 %v2328_v5, %v398_v55  ;;  %v728_v61 = vadd.f32 %v2330_v6, %v398_v55  ;;  %v754_v8 = vadd.f32 %v2350_v19, %v423_v22  ;;  %v758_v9 = vadd.f32 %v2354_v23, %v428_v42 }
 0x149   : > { %v889_v24 = vrot.slane %v888_v17, 2  ;;  %v901_v26 = vadd.f32 %v900_v20, %v899_v12  ;;  %v744_v12 = vadd.f32 %v2342_v13, %v413_v43  ;;  %v748_v20 = vadd.f32 %v2346_v16, %v418_v30  ;;  %v2058_v30 = vld [vmem:[%s3307_s5] sm:$0xff]  }
 0x14b   : > { %v890_v28 = vadd.f32 %v889_v24, %v888_v17  ;;  %v902_v29 = vrot.slane %v901_v26, 2  ;;  %v752_v17 = vadd.f32 %v2348_v18, %v423_v22 }
 0x14d   : > { %v891_v31 = vrot.slane %v890_v28, 1  ;;  %v903_v33 = vadd.f32 %v902_v29, %v901_v26 }
 0x14f   : > { %v892_v34 = vadd.f32 %v891_v31, %v890_v28  ;;  %v904_v15 = vrot.slane %v903_v33, 1 }
 0x151   : > { %v912_v27 = vadd.f32 %v910_v35, %v892_v34  ;;  %v905_v36 = vadd.f32 %v904_v15, %v903_v33 }
 0x153   : > { %v914_v25 = vsub.f32 0.0, %v912_v27  ;;  %v913_v37 = vadd.f32 %v910_v35, %v905_v36 }
 0x155   : > { %v916_v38 = vmul.f32 1.442695, %v914_v25  ;;  %v915_v39 = vsub.f32 0.0, %v913_v37 }
 0x157   : > { %2063 = vpow2.f32 %v916_v38  ;;  %v918_v41 = vmul.f32 1.442695, %v915_v39 }
 0x159   : > { %2065 = vpow2.f32 %v918_v41 }
 0x164   : > { %v2064_v44 = vpop.eup %2063 }
 0x165   : > { %v920_v45 = vadd.f32 1.0, %v2064_v44 }
 0x166   : > { %v2066_v47 = vpop.eup %2065 }
 0x167   : > { %2067 = vrcp.f32 %v920_v45  ;;  %v921_v48 = vadd.f32 1.0, %v2066_v47  ;;  %v2059_v45 = vld [vmem:[%s3307_s5 + $0x8] sm:$0xff]   ;;  %v2060_v47 = vld [vmem:[%s3307_s5 + $0x10] sm:$0xff]  }
 0x169   : > { %2069 = vrcp.f32 %v921_v48  ;;  %v2061_v48 = vld [vmem:[%s3307_s5 + $0x18] sm:$0xff]  }
 0x174   : > { %v2068_v46 = vpop.eup %2067 }
 0x175   : > { %v929_v5 = vrot.slane %v2068_v46, %v2360_v56 }
 0x176   : > { %v2070_v6 = vpop.eup %2069 }
 0x177   : > { %v933_v10 = vrot.slane %v2070_v6, %v2360_v56  ;;  %v946_v11 = vmul.f32 %v929_v5, %v752_v17  ;;  %v948_v24 = vmul.f32 %v929_v5, %v756_v4  ;;  %v942_v13 = vmul.f32 %v929_v5, %v742_v3 }
 0x178   : > { %v944_v26 = vmul.f32 %v929_v5, %v746_v7  ;;  %v938_v18 = vmul.f32 %v929_v5, %v732_v62  ;;  %v940_v28 = vmul.f32 %v929_v5, %v736_v0  ;;  %v934_v21 = vmul.f32 %v929_v5, %v722_v57 }
 0x179   : > { %v947_v29 = vmul.f32 %v933_v10, %v754_v8  ;;  %v949_v31 = vmul.f32 %v933_v10, %v758_v9  ;;  %v965_v33 = vpack.c.bf16 %v948_v24, %v946_v11  ;;  %v943_v14 = vmul.f32 %v933_v10, %v744_v12 }
 0x17a   : > { %v945_v34 = vmul.f32 %v933_v10, %v748_v20  ;;  %v963_v16 = vpack.c.bf16 %v944_v26, %v942_v13  ;;  %v939_v15 = vmul.f32 %v933_v10, %v734_v63  ;;  %v941_v19 = vmul.f32 %v933_v10, %v738_v2 }
 0x17b   : > { %v966_v35 = vpack.c.bf16 %v949_v31, %v947_v29  ;;  %v961_v23 = vpack.c.bf16 %v940_v28, %v938_v18  ;;  %v935_v27 = vmul.f32 %v933_v10, %v724_v59  ;;  %v937_v36 = vmul.f32 %v933_v10, %v728_v61 }
 0x17c   : > { %v964_v25 = vpack.c.bf16 %v945_v34, %v943_v14  ;;  %v962_v37 = vpack.c.bf16 %v941_v19, %v939_v15  ;;  %v936_v38 = vmul.f32 %v929_v5, %v726_v60  ;;  %v1787_v39 = vcombine.low %v2068_v46, %v2070_v6 }
 0x17d   : > { %1013 = vmatprep.subr.bf16.mxu1 %v966_v35  ;;  %v960_v41 = vpack.c.bf16 %v937_v36, %v935_v27  ;;  %v2481_v8 = vand.u32 127, %v926_v32 }
 0x17e   : > { %1014 = vmatpush1.bf16.msra.mxu1 %v965_v33  ;;  %v959_v22 = vpack.c.bf16 %v936_v38, %v934_v21  ;;  %v1794_v42 = vrot.slane %v1787_v39, %v2364_v58 }
 0x17f   : > { %1015 = vmatprep.subr.bf16.mxu1 %v964_v25  ;;  %vm1124_vm2 = vcmp.lt.s32.totalorder %v2481_v8, 127  ;;  %vm1189_vm3 = vcmp.lt.s32.totalorder %v2481_v8, 126  ;;  %vm1254_vm4 = vcmp.lt.s32.totalorder %v2481_v8, 124  ;;  %vm1319_vm5 = vcmp.lt.s32.totalorder %v2481_v8, 112 }
 0x180   : > { %v1801_v44 = vrot.slane %v1794_v42, %v2364_v58  ;;  %vm1384_vm6 = vcmp.lt.s32.totalorder %v2481_v8, 96  ;;  %vm1449_vm7 = vcmp.lt.s32.totalorder %v2481_v8, 64  ;;  %vm1734_vm8 = vcmp.lt.s32.totalorder %v2481_v8, 1 }
 0x181   : > { %vm1743_vm9 = vcmp.lt.s32.totalorder %v2481_v8, 2  ;;  %vm1752_vm10 = vcmp.lt.s32.totalorder %v2481_v8, 4  ;;  %vm1761_vm11 = vcmp.lt.s32.totalorder %v2481_v8, 16  ;;  %vm1770_vm12 = vcmp.lt.s32.totalorder %v2481_v8, 32 }
 0x182   : > { %1016 = vmatpush1.bf16.msra.mxu1 %v963_v16  ;;  %1807 = vst.msk [vmem:[%s2388_s25] ss:$4 sm:$0x3] %vm2391_vm1, %v1801_v44 }
 0x183   : > { %1017 = vmatprep.subr.bf16.mxu1 %v962_v37 }
 0x186   : > { %1018 = vmatpush1.bf16.msra.mxu1 %v961_v23 }
 0x187   : > { %1019 = vmatprep.subr.bf16.mxu1 %v960_v41 }
 0x18a   : > { %1020 = vmatpush1.bf16.msra.mxu1 %v959_v22 }
 0x18d   : > { %1964 = vmatmul.mubr.msk.bf16.vlgmr.msra.gmra.mxu1 %vm662_vm0, %v2058_v30 }
 0x18e   : > { %1047 = vmatprep.mubr.bf16.mxu1 %v2087_v1 }
 0x195   : > { %1965 = vmatmul.mubr.msk.bf16.gmra.mxu1 %vm662_vm0, %v2059_v45 }
 0x196   : > { %1057 = vmatprep.mubr.bf16.mxu1 %v2087_v1 }
 0x19d   : > { %1966 = vmatmul.mubr.msk.bf16.gmra.mxu1 %vm662_vm0, %v2060_v47 }
 0x19e   : > { %1067 = vmatprep.mubr.bf16.mxu1 %v2087_v1 }
 0x1a5   : > { %1967 = vmatmul.mubr.msk.bf16.gmra.mxu1 %vm662_vm0, %v2061_v48 }
 0x1a6   : > { %1077 = vmatprep.mubr.bf16.mxu1 %v2087_v1 }
 0x1ad   : > { %1968 = vmatmul.mubr.msk.bf16.gmra.mxu1 %vm662_vm0, %v2062_v49 }
 0x24d   : > { %v1039_v50 = vpop.f32.mrf.mxu1 }
 0x24e   : > { %1090 = vrot.lane.b32.xlu1 %v1039_v50, %s2089_s16 }
 0x24f   : > { %v1041_v51 = vpop.f32.mrf.mxu1 }
 0x251   : > { %v1043_v40 = vpop.f32.mrf.mxu1 }
 0x252   : > { %1106 = vrot.lane.b32.xlu1 %v1041_v51, %s2089_s16  ;;  %1092 = vrot.lane.b32.xlu0 %v1043_v40, %s2089_s16 }
 0x253   : > { %v1045_v53 = vpop.f32.mrf.mxu1 }
 0x255   : > { %v1049_v54 = vpop.f32.mrf.mxu1 }
 0x256   : > { %1108 = vrot.lane.b32.xlu0 %v1045_v53, %s2089_s16  ;;  %1094 = vrot.lane.b32.xlu1 %v1049_v54, %s2089_s16 }
 0x257   : > { %v2428_v1 = vpop.f32.mrf.mxu1 }
 0x259   : > { %v2430_v55 = vpop.f32.mrf.mxu1 }
 0x25a   : > { %1110 = vrot.lane.b32.xlu0 %v2428_v1, %s2089_s16  ;;  %1096 = vrot.lane.b32.xlu1 %v2430_v55, %s2089_s16 }
 0x25b   : > { %v2436_v57 = vpop.f32.mrf.mxu1 }
 0x25d   : > { %v2438_v59 = vpop.f32.mrf.mxu1 }
 0x25e   : > { %1112 = vrot.lane.b32.xlu0 %v2436_v57, %s2089_s16  ;;  %1098 = vrot.lane.b32.xlu1 %v2438_v59, %s2089_s16 }
 0x25f   : > { %v2444_v60 = vpop.f32.mrf.mxu1 }
 0x261   : > { %v2446_v61 = vpop.f32.mrf.mxu1 }
 0x262   : > { %1114 = vrot.lane.b32.xlu0 %v2444_v60, %s2089_s16  ;;  %1100 = vrot.lane.b32.xlu1 %v2446_v61, %s2089_s16 }
 0x263   : > { %v2452_v62 = vpop.f32.mrf.mxu1 }
 0x265   : > { %v2454_v46 = vpop.f32.mrf.mxu1 }
 0x266   : > { %1116 = vrot.lane.b32.xlu0 %v2452_v62, %s2089_s16  ;;  %1102 = vrot.lane.b32.xlu1 %v2454_v46, %s2089_s16 }
 0x267   : > { %v2460_v63 = vpop.f32.mrf.mxu1 }
 0x269   : > { %v2462_v0 = vpop.f32.mrf.mxu1 }
 0x26a   : > { %1118 = vrot.lane.b32.xlu0 %v2460_v63, %s2089_s16  ;;  %1104 = vrot.lane.b32.xlu1 %v2462_v0, %s2089_s16 }
 0x26b   : > { %v2468_v2 = vpop.f32.mrf.mxu1 }
 0x26d   : > { %v1079_v3 = vpop.f32.mrf.mxu1 }
 0x26e   : > { %v1086_v12 = vmul.f32 1.442695, %v1079_v3  ;;  %1120 = vrot.lane.b32.xlu0 %v2468_v2, %s2089_s16 }
 0x26f   : > { %v1081_v17 = vpop.f32.mrf.mxu1 }
 0x270   : > { %2071 = vpow2.f32 %v1086_v12  ;;  %v1088_v4 = vmul.f32 1.442695, %v1081_v17 }
 0x271   : > { %v1083_v5 = vpop.f32.mrf.mxu1 }
 0x272   : > { %2073 = vpow2.f32 %v1088_v4 }
 0x273   : > { %v1084_v6 = vpop.f32.mrf.mxu1 }
 0x27d   : > { %v2472_v7 = vpop.eup %2071 }
 0x27e   : > { %1482 = vrot.lane.b32.xlu1 %v2472_v7, %s2089_s16 }
 0x27f   : > { %v2476_v20 = vpop.eup %2073 }
 0x280   : > { %1484 = vrot.lane.b32.xlu0 %v2476_v20, %s2089_s16 }
 0x2c0   : > { %v1091_v9 = vpop.permute.xlu1 %1090 }
 0x2c4   : > { %v1107_v10 = vpop.permute.xlu1 %1106  ;;  %v1093_v11 = vpop.permute.xlu0 %1092 }
 0x2c5   : > { %v1125_v24 = vsel %vm1124_vm2, %v1091_v9, %v1107_v10  ;;  %v1133_v26 = vsel %vm1124_vm2, %v1107_v10, %v1091_v9 }
 0x2c6   : > { %v2486_v13 = vadd.f32 %v1125_v24, %v1039_v50  ;;  %v2494_v21 = vadd.f32 %v1133_v26, %v1041_v51 }
 0x2c8   : > { %v1109_v18 = vpop.permute.xlu0 %1108  ;;  %1157 = vrot.lane.b32.xlu1 %v2486_v13, %s2090_s17  ;;  %v1095_v32 = vpop.permute.xlu1 %1094 }
 0x2c9   : > { %v1126_v28 = vsel %vm1124_vm2, %v1093_v11, %v1109_v18  ;;  %v1134_v31 = vsel %vm1124_vm2, %v1109_v18, %v1093_v11 }
 0x2ca   : > { %v2496_v29 = vadd.f32 %v1126_v28, %v1043_v40  ;;  %v2508_v15 = vadd.f32 %v1134_v31, %v1045_v53 }
 0x2cc   : > { %v1111_v33 = vpop.permute.xlu0 %1110  ;;  %1173 = vrot.lane.b32.xlu1 %v2494_v21, %s2090_s17  ;;  %1159 = vrot.lane.b32.xlu0 %v2496_v29, %s2090_s17  ;;  %v1097_v14 = vpop.permute.xlu1 %1096 }
 0x2cd   : > { %v1127_v34 = vsel %vm1124_vm2, %v1095_v32, %v1111_v33  ;;  %v1135_v19 = vsel %vm1124_vm2, %v1111_v33, %v1095_v32 }
 0x2ce   : > { %v2506_v16 = vadd.f32 %v1127_v34, %v1049_v54  ;;  %v2522_v25 = vadd.f32 %v1135_v19, %v2428_v1 }
 0x2d0   : > { %v1113_v35 = vpop.permute.xlu0 %1112  ;;  %1161 = vrot.lane.b32.xlu1 %v2506_v16, %s2090_s17  ;;  %1175 = vrot.lane.b32.xlu0 %v2508_v15, %s2090_s17  ;;  %v1099_v23 = vpop.permute.xlu1 %1098 }
 0x2d1   : > { %v1128_v27 = vsel %vm1124_vm2, %v1097_v14, %v1113_v35  ;;  %v1136_v37 = vsel %vm1124_vm2, %v1113_v35, %v1097_v14 }
 0x2d2   : > { %v2519_v36 = vadd.f32 %v1128_v27, %v2430_v55  ;;  %v2536_v42 = vadd.f32 %v1136_v37, %v2436_v57 }
 0x2d4   : > { %v1115_v38 = vpop.permute.xlu0 %1114  ;;  %1163 = vrot.lane.b32.xlu1 %v2519_v36, %s2090_s17  ;;  %1177 = vrot.lane.b32.xlu0 %v2522_v25, %s2090_s17  ;;  %v1101_v39 = vpop.permute.xlu1 %1100 }
 0x2d5   : > { %v1129_v41 = vsel %vm1124_vm2, %v1099_v23, %v1115_v38  ;;  %v1137_v44 = vsel %vm1124_vm2, %v1115_v38, %v1099_v23 }
 0x2d6   : > { %v2533_v22 = vadd.f32 %v1129_v41, %v2438_v59  ;;  %v2550_v49 = vadd.f32 %v1137_v44, %v2444_v60 }
 0x2d8   : > { %v1117_v30 = vpop.permute.xlu0 %1116  ;;  %1165 = vrot.lane.b32.xlu1 %v2533_v22, %s2090_s17  ;;  %1179 = vrot.lane.b32.xlu0 %v2536_v42, %s2090_s17  ;;  %v1103_v45 = vpop.permute.xlu1 %1102 }
 0x2d9   : > { %v1130_v47 = vsel %vm1124_vm2, %v1101_v39, %v1117_v30  ;;  %v1138_v50 = vsel %vm1124_vm2, %v1117_v30, %v1101_v39 }
 0x2da   : > { %v2547_v48 = vadd.f32 %v1130_v47, %v2446_v61  ;;  %v2564_v1 = vadd.f32 %v1138_v50, %v2452_v62 }
 0x2dc   : > { %v1119_v51 = vpop.permute.xlu0 %1118  ;;  %1167 = vrot.lane.b32.xlu1 %v2547_v48, %s2090_s17  ;;  %1181 = vrot.lane.b32.xlu0 %v2550_v49, %s2090_s17  ;;  %v1105_v53 = vpop.permute.xlu1 %1104 }
 0x2dd   : > { %v1131_v40 = vsel %vm1124_vm2, %v1103_v45, %v1119_v51  ;;  %v1139_v55 = vsel %vm1124_vm2, %v1119_v51, %v1103_v45 }
 0x2de   : > { %v2561_v54 = vadd.f32 %v1131_v40, %v2454_v46  ;;  %v2578_v61 = vadd.f32 %v1139_v55, %v2460_v63 }
 0x2e0   : > { %v1121_v57 = vpop.permute.xlu0 %1120  ;;  %1169 = vrot.lane.b32.xlu1 %v2561_v54, %s2090_s17  ;;  %1183 = vrot.lane.b32.xlu0 %v2564_v1, %s2090_s17 }
 0x2e1   : > { %v1132_v59 = vsel %vm1124_vm2, %v1105_v53, %v1121_v57  ;;  %v1140_v62 = vsel %vm1124_vm2, %v1121_v57, %v1105_v53 }
 0x2e2   : > { %v2575_v60 = vadd.f32 %v1132_v59, %v2462_v0  ;;  %v2587_v46 = vadd.f32 %v1140_v62, %v2468_v2 }
 0x2e4   : > { %1171 = vrot.lane.b32.xlu1 %v2575_v60, %s2090_s17  ;;  %1185 = vrot.lane.b32.xlu0 %v2578_v61, %s2090_s17 }
 0x2e8   : > { %1187 = vrot.lane.b32.xlu0 %v2587_v46, %s2090_s17 }
 0x2f0   : > { %v1483_v0 = vpop.permute.xlu1 %1482 }
 0x2f2   : > { %v1485_v3 = vpop.permute.xlu0 %1484 }
 0x2f3   : > { %v1486_v63 = vsel %vm1124_vm2, %v1483_v0, %v1485_v3  ;;  %v1487_v12 = vsel %vm1124_vm2, %v1485_v3, %v1483_v0 }
 0x2f4   : > { %v2596_v17 = vadd.f32 %v2476_v20, %v1487_v12  ;;  %v2599_v4 = vadd.f32 %v2472_v7, %v1486_v63 }
 0x2f6   : > { %1492 = vrot.lane.b32.xlu0 %v2596_v17, %s2090_s17  ;;  %1490 = vrot.lane.b32.xlu1 %v2599_v4, %s2090_s17 }
 0x33a   : > { %v1158_v2 = vpop.permute.xlu1 %1157 }
 0x33e   : > { %v1174_v5 = vpop.permute.xlu1 %1173  ;;  %v1160_v6 = vpop.permute.xlu0 %1159 }
 0x33f   : > { %v1190_v9 = vsel %vm1189_vm3, %v1158_v2, %v1174_v5  ;;  %v1198_v11 = vsel %vm1189_vm3, %v1174_v5, %v1158_v2 }
 0x340   : > { %v2609_v10 = vadd.f32 %v1190_v9, %v2486_v13  ;;  %v2618_v32 = vadd.f32 %v1198_v11, %v2494_v21 }
 0x342   : > { %v1162_v24 = vpop.permute.xlu1 %1161  ;;  %1222 = vrot.lane.b32.xlu1 %v2609_v10, %s2091_s18  ;;  %v1176_v26 = vpop.permute.xlu0 %1175 }
 0x343   : > { %v1191_v18 = vsel %vm1189_vm3, %v1160_v6, %v1176_v26  ;;  %v1199_v13 = vsel %vm1189_vm3, %v1176_v26, %v1160_v6 }
 0x344   : > { %v2621_v28 = vadd.f32 %v1191_v18, %v2496_v29  ;;  %v2632_v21 = vadd.f32 %v1199_v13, %v2508_v15 }
 0x346   : > { %v1164_v31 = vpop.permute.xlu1 %1163  ;;  %1238 = vrot.lane.b32.xlu1 %v2618_v32, %s2091_s18  ;;  %1224 = vrot.lane.b32.xlu0 %v2621_v28, %s2091_s18  ;;  %v1178_v33 = vpop.permute.xlu0 %1177 }
 0x347   : > { %v1192_v14 = vsel %vm1189_vm3, %v1162_v24, %v1178_v33  ;;  %v1200_v34 = vsel %vm1189_vm3, %v1178_v33, %v1162_v24 }
 0x348   : > { %v2635_v29 = vadd.f32 %v1192_v14, %v2506_v16  ;;  %v2646_v15 = vadd.f32 %v1200_v34, %v2522_v25 }
 0x34a   : > { %v1166_v19 = vpop.permute.xlu1 %1165  ;;  %1240 = vrot.lane.b32.xlu0 %v2632_v21, %s2091_s18  ;;  %1226 = vrot.lane.b32.xlu1 %v2635_v29, %s2091_s18  ;;  %v1180_v35 = vpop.permute.xlu0 %1179 }
 0x34b   : > { %v1193_v23 = vsel %vm1189_vm3, %v1164_v31, %v1180_v35  ;;  %v1201_v27 = vsel %vm1189_vm3, %v1180_v35, %v1164_v31 }
 0x34c   : > { %v2649_v16 = vadd.f32 %v1193_v23, %v2519_v36  ;;  %v2660_v25 = vadd.f32 %v1201_v27, %v2536_v42 }
 0x34e   : > { %v1168_v37 = vpop.permute.xlu1 %1167  ;;  %1242 = vrot.lane.b32.xlu0 %v2646_v15, %s2091_s18  ;;  %1228 = vrot.lane.b32.xlu1 %v2649_v16, %s2091_s18  ;;  %v1182_v38 = vpop.permute.xlu0 %1181 }
 0x34f   : > { %v1194_v39 = vsel %vm1189_vm3, %v1166_v19, %v1182_v38  ;;  %v1202_v41 = vsel %vm1189_vm3, %v1182_v38, %v1166_v19 }
 0x350   : > { %v2663_v36 = vadd.f32 %v1194_v39, %v2533_v22  ;;  %v2674_v42 = vadd.f32 %v1202_v41, %v2550_v49 }
 0x352   : > { %1244 = vrot.lane.b32.xlu0 %v2660_v25, %s2091_s18  ;;  %1230 = vrot.lane.b32.xlu1 %v2663_v36, %s2091_s18  ;;  %v1184_v44 = vpop.permute.xlu0 %1183  ;;  %v1170_v45 = vpop.permute.xlu1 %1169 }
 0x353   : > { %v1195_v30 = vsel %vm1189_vm3, %v1168_v37, %v1184_v44  ;;  %v1203_v47 = vsel %vm1189_vm3, %v1184_v44, %v1168_v37 }
 0x354   : > { %v2677_v22 = vadd.f32 %v1195_v30, %v2547_v48  ;;  %v2688_v40 = vadd.f32 %v1203_v47, %v2564_v1 }
 0x356   : > { %1246 = vrot.lane.b32.xlu0 %v2674_v42, %s2091_s18  ;;  %1232 = vrot.lane.b32.xlu1 %v2677_v22, %s2091_s18  ;;  %v1186_v50 = vpop.permute.xlu0 %1185  ;;  %v1172_v53 = vpop.permute.xlu1 %1171 }
 0x357   : > { %v1196_v51 = vsel %vm1189_vm3, %v1170_v45, %v1186_v50  ;;  %v1204_v48 = vsel %vm1189_vm3, %v1186_v50, %v1170_v45 }
 0x358   : > { %v2691_v49 = vadd.f32 %v1196_v51, %v2561_v54  ;;  %v2702_v1 = vadd.f32 %v1204_v48, %v2578_v61 }
 0x35a   : > { %1248 = vrot.lane.b32.xlu0 %v2688_v40, %s2091_s18  ;;  %1234 = vrot.lane.b32.xlu1 %v2691_v49, %s2091_s18  ;;  %v1188_v55 = vpop.permute.xlu0 %1187 }
 0x35b   : > { %v1197_v57 = vsel %vm1189_vm3, %v1172_v53, %v1188_v55  ;;  %v1205_v59 = vsel %vm1189_vm3, %v1188_v55, %v1172_v53 }
 0x35c   : > { %v2705_v54 = vadd.f32 %v1197_v57, %v2575_v60  ;;  %v2714_v62 = vadd.f32 %v1205_v59, %v2587_v46 }
 0x35e   : > { %1250 = vrot.lane.b32.xlu0 %v2702_v1, %s2091_s18  ;;  %1236 = vrot.lane.b32.xlu1 %v2705_v54, %s2091_s18 }
 0x362   : > { %1252 = vrot.lane.b32.xlu0 %v2714_v62, %s2091_s18 }
 0x368   : > { %v1491_v61 = vpop.permute.xlu1 %1490  ;;  %v1493_v0 = vpop.permute.xlu0 %1492 }
 0x369   : > { %v1494_v60 = vsel %vm1189_vm3, %v1491_v61, %v1493_v0  ;;  %v1495_v3 = vsel %vm1189_vm3, %v1493_v0, %v1491_v61 }
 0x36a   : > { %v2723_v63 = vadd.f32 %v1495_v3, %v2596_v17  ;;  %v2726_v12 = vadd.f32 %v1494_v60, %v2599_v4 }
 0x36c   : > { %1500 = vrot.lane.b32.xlu0 %v2723_v63, %s2091_s18  ;;  %1498 = vrot.lane.b32.xlu1 %v2726_v12, %s2091_s18 }
 0x3b4   : > { %v1223_v46 = vpop.permute.xlu1 %1222 }
 0x3b8   : > { %v1239_v2 = vpop.permute.xlu1 %1238  ;;  %v1225_v5 = vpop.permute.xlu0 %1224 }
 0x3b9   : > { %v1255_v6 = vsel %vm1254_vm4, %v1223_v46, %v1239_v2  ;;  %v1263_v4 = vsel %vm1254_vm4, %v1239_v2, %v1223_v46  ;;  %v1530_v46 = vld [vmem:[%s3308_s6] sm:$0xff] }
 0x3ba   : > { %v2736_v17 = vadd.f32 %v1255_v6, %v2609_v10  ;;  %v2748_v18 = vadd.f32 %v1263_v4, %v2618_v32 }
 0x3bc   : > { %v1227_v9 = vpop.permute.xlu1 %1226  ;;  %1287 = vrot.lane.b32.xlu1 %v2736_v17, %s2092_s19  ;;  %v1241_v11 = vpop.permute.xlu0 %1240 }
 0x3bd   : > { %v1256_v24 = vsel %vm1254_vm4, %v1225_v5, %v1241_v11  ;;  %v1264_v10 = vsel %vm1254_vm4, %v1241_v11, %v1225_v5 }
 0x3be   : > { %v2745_v26 = vadd.f32 %v1256_v24, %v2621_v28  ;;  %v2759_v28 = vadd.f32 %v1264_v10, %v2632_v21 }
 0x3c0   : > { %v1229_v13 = vpop.permute.xlu1 %1228  ;;  %1303 = vrot.lane.b32.xlu1 %v2748_v18, %s2092_s19  ;;  %1289 = vrot.lane.b32.xlu0 %v2745_v26, %s2092_s19  ;;  %v1243_v31 = vpop.permute.xlu0 %1242 }
 0x3c1   : > { %v1257_v33 = vsel %vm1254_vm4, %v1227_v9, %v1243_v31  ;;  %v1265_v14 = vsel %vm1254_vm4, %v1243_v31, %v1227_v9 }
 0x3c2   : > { %v2762_v32 = vadd.f32 %v1257_v33, %v2635_v29  ;;  %v2773_v21 = vadd.f32 %v1265_v14, %v2646_v15 }
 0x3c4   : > { %v1231_v34 = vpop.permute.xlu1 %1230  ;;  %1305 = vrot.lane.b32.xlu0 %v2759_v28, %s2092_s19  ;;  %1291 = vrot.lane.b32.xlu1 %v2762_v32, %s2092_s19  ;;  %v1245_v19 = vpop.permute.xlu0 %1244 }
 0x3c5   : > { %v1258_v35 = vsel %vm1254_vm4, %v1229_v13, %v1245_v19  ;;  %v1266_v23 = vsel %vm1254_vm4, %v1245_v19, %v1229_v13 }
 0x3c6   : > { %v2776_v29 = vadd.f32 %v1258_v35, %v2649_v16  ;;  %v2787_v15 = vadd.f32 %v1266_v23, %v2660_v25 }
 0x3c8   : > { %v1233_v27 = vpop.permute.xlu1 %1232  ;;  %1307 = vrot.lane.b32.xlu0 %v2773_v21, %s2092_s19  ;;  %1293 = vrot.lane.b32.xlu1 %v2776_v29, %s2092_s19  ;;  %v1247_v37 = vpop.permute.xlu0 %1246 }
 0x3c9   : > { %v1259_v38 = vsel %vm1254_vm4, %v1231_v34, %v1247_v37  ;;  %v1267_v39 = vsel %vm1254_vm4, %v1247_v37, %v1231_v34 }
 0x3ca   : > { %v2790_v16 = vadd.f32 %v1259_v38, %v2663_v36  ;;  %v2801_v30 = vadd.f32 %v1267_v39, %v2674_v42 }
 0x3cc   : > { %1309 = vrot.lane.b32.xlu0 %v2787_v15, %s2092_s19  ;;  %1295 = vrot.lane.b32.xlu1 %v2790_v16, %s2092_s19  ;;  %v1249_v41 = vpop.permute.xlu0 %1248  ;;  %v1235_v25 = vpop.permute.xlu1 %1234 }
 0x3cd   : > { %v1260_v44 = vsel %vm1254_vm4, %v1233_v27, %v1249_v41  ;;  %v1268_v45 = vsel %vm1254_vm4, %v1249_v41, %v1233_v27 }
 0x3ce   : > { %v2804_v36 = vadd.f32 %v1260_v44, %v2677_v22  ;;  %v2815_v42 = vadd.f32 %v1268_v45, %v2688_v40 }
 0x3d0   : > { %1311 = vrot.lane.b32.xlu0 %v2801_v30, %s2092_s19  ;;  %1297 = vrot.lane.b32.xlu1 %v2804_v36, %s2092_s19  ;;  %v1251_v47 = vpop.permute.xlu0 %1250  ;;  %v1237_v48 = vpop.permute.xlu1 %1236 }
 0x3d1   : > { %v1261_v50 = vsel %vm1254_vm4, %v1235_v25, %v1251_v47  ;;  %v1269_v22 = vsel %vm1254_vm4, %v1251_v47, %v1235_v25 }
 0x3d2   : > { %v2818_v51 = vadd.f32 %v1261_v50, %v2691_v49  ;;  %v2829_v40 = vadd.f32 %v1269_v22, %v2702_v1 }
 0x3d4   : > { %1313 = vrot.lane.b32.xlu0 %v2815_v42, %s2092_s19  ;;  %1299 = vrot.lane.b32.xlu1 %v2818_v51, %s2092_s19  ;;  %v1253_v53 = vpop.permute.xlu0 %1252 }
 0x3d5   : > { %v1262_v55 = vsel %vm1254_vm4, %v1237_v48, %v1253_v53  ;;  %v1270_v57 = vsel %vm1254_vm4, %v1253_v53, %v1237_v48 }
 0x3d6   : > { %v2832_v49 = vadd.f32 %v1262_v55, %v2705_v54  ;;  %v2841_v59 = vadd.f32 %v1270_v57, %v2714_v62  ;;  %v1531_v62 = vld [vmem:[%s3308_s6 + $0x8] sm:$0xff] }
 0x3d8   : > { %1315 = vrot.lane.b32.xlu0 %v2829_v40, %s2092_s19  ;;  %1301 = vrot.lane.b32.xlu1 %v2832_v49, %s2092_s19 }
 0x3dc   : > { %1317 = vrot.lane.b32.xlu0 %v2841_v59, %s2092_s19 }
 0x3de   : > { %v1499_v1 = vpop.permute.xlu1 %1498  ;;  %v1501_v61 = vpop.permute.xlu0 %1500 }
 0x3df   : > { %v1502_v54 = vsel %vm1254_vm4, %v1499_v1, %v1501_v61  ;;  %v1503_v0 = vsel %vm1254_vm4, %v1501_v61, %v1499_v1  ;;  %v1532_v61 = vld [vmem:[%s3308_s6 + $0x10] sm:$0xff] }
 0x3e0   : > { %v2850_v60 = vadd.f32 %v1502_v54, %v2726_v12  ;;  %v2853_v3 = vadd.f32 %v1503_v0, %v2723_v63 }
 0x3e2   : > { %1508 = vrot.lane.b32.xlu0 %v2853_v3, %s2092_s19  ;;  %1506 = vrot.lane.b32.xlu1 %v2850_v60, %s2092_s19 }
 0x3e6   : > { %1545 = vperm.xlu0 %1996, %v1531_v62   ;;  %1540 = vperm.xlu1 %1997, %v1530_v46   ;;  %v1533_v62 = vld [vmem:[%s3308_s6 + $0x18] sm:$0xff] }
 0x42e   : > { %v1288_v12 = vpop.permute.xlu1 %1287 }
 0x432   : > { %v1304_v63 = vpop.permute.xlu1 %1303  ;;  %v1290_v2 = vpop.permute.xlu0 %1289 }
 0x433   : > { %v1320_v5 = vsel %vm1319_vm5, %v1288_v12, %v1304_v63  ;;  %v1328_v4 = vsel %vm1319_vm5, %v1304_v63, %v1288_v12  ;;  %v1610_v12 = vld [vmem:[%s3309_s7] sm:$0xff] }
 0x434   : > { %v2869_v6 = vadd.f32 %v1320_v5, %v2736_v17  ;;  %v2878_v10 = vadd.f32 %v1328_v4, %v2748_v18  ;;  %v1612_v5 = vld [vmem:[%s3309_s7 + $0x10] sm:$0xff]  ;;  %v1613_v4 = vld [vmem:[%s3309_s7 + $0x18] sm:$0xff] }
 0x436   : > { %v1292_v9 = vpop.permute.xlu1 %1291  ;;  %1352 = vrot.lane.b32.xlu1 %v2869_v6, %s2093_s20  ;;  %v1306_v11 = vpop.permute.xlu0 %1305 }
 0x437   : > { %v1321_v24 = vsel %vm1319_vm5, %v1290_v2, %v1306_v11  ;;  %v1329_v17 = vsel %vm1319_vm5, %v1306_v11, %v1290_v2  ;;  %v1534_v2 = vld [vmem:[%s3308_s6 + $0x20] sm:$0xff] }
 0x438   : > { %v2881_v13 = vadd.f32 %v1321_v24, %v2745_v26  ;;  %v2892_v18 = vadd.f32 %v1329_v17, %v2759_v28  ;;  %v1614_v11 = vld [vmem:[%s3309_s7 + $0x20] sm:$0xff]  ;;  %v1537_v24 = vld [vmem:[%s3308_s6 + $0x38] sm:$0xff]  ;;  %v1615_v17 = vld [vmem:[%s3309_s7 + $0x28] sm:$0xff] }
 0x43a   : > { %v1294_v31 = vpop.permute.xlu1 %1293  ;;  %1368 = vrot.lane.b32.xlu1 %v2878_v10, %s2093_s20  ;;  %1354 = vrot.lane.b32.xlu0 %v2881_v13, %s2093_s20  ;;  %v1308_v33 = vpop.permute.xlu0 %1307 }
 0x43b   : > { %v1322_v14 = vsel %vm1319_vm5, %v1292_v9, %v1308_v33  ;;  %v1330_v34 = vsel %vm1319_vm5, %v1308_v33, %v1292_v9  ;;  %v1536_v9 = vld [vmem:[%s3308_s6 + $0x30] sm:$0xff] }
 0x43c   : > { %v2895_v26 = vadd.f32 %v1322_v14, %v2762_v32  ;;  %v2906_v28 = vadd.f32 %v1330_v34, %v2773_v21 }
 0x43e   : > { %v1296_v19 = vpop.permute.xlu1 %1295  ;;  %1370 = vrot.lane.b32.xlu0 %v2892_v18, %s2093_s20  ;;  %1356 = vrot.lane.b32.xlu1 %v2895_v26, %s2093_s20  ;;  %v1310_v35 = vpop.permute.xlu0 %1309 }
 0x43f   : > { %v1323_v23 = vsel %vm1319_vm5, %v1294_v31, %v1310_v35  ;;  %v1331_v27 = vsel %vm1319_vm5, %v1310_v35, %v1294_v31 }
 0x440   : > { %v2909_v32 = vadd.f32 %v1323_v23, %v2776_v29  ;;  %v2920_v21 = vadd.f32 %v1331_v27, %v2787_v15 }
 0x442   : > { %v1298_v37 = vpop.permute.xlu1 %1297  ;;  %1372 = vrot.lane.b32.xlu0 %v2906_v28, %s2093_s20  ;;  %1358 = vrot.lane.b32.xlu1 %v2909_v32, %s2093_s20  ;;  %v1312_v38 = vpop.permute.xlu0 %1311 }
 0x443   : > { %v1324_v39 = vsel %vm1319_vm5, %v1296_v19, %v1312_v38  ;;  %v1332_v41 = vsel %vm1319_vm5, %v1312_v38, %v1296_v19 }
 0x444   : > { %v2923_v29 = vadd.f32 %v1324_v39, %v2790_v16  ;;  %v2934_v45 = vadd.f32 %v1332_v41, %v2801_v30 }
 0x446   : > { %1374 = vrot.lane.b32.xlu0 %v2920_v21, %s2093_s20  ;;  %1360 = vrot.lane.b32.xlu1 %v2923_v29, %s2093_s20  ;;  %v1314_v44 = vpop.permute.xlu0 %1313  ;;  %v1300_v15 = vpop.permute.xlu1 %1299 }
 0x447   : > { %v1325_v25 = vsel %vm1319_vm5, %v1298_v37, %v1314_v44  ;;  %v1333_v47 = vsel %vm1319_vm5, %v1314_v44, %v1298_v37 }
 0x448   : > { %v2937_v16 = vadd.f32 %v1325_v25, %v2804_v36  ;;  %v2948_v30 = vadd.f32 %v1333_v47, %v2815_v42 }
 0x44a   : > { %1376 = vrot.lane.b32.xlu0 %v2934_v45, %s2093_s20  ;;  %1362 = vrot.lane.b32.xlu1 %v2937_v16, %s2093_s20  ;;  %v1316_v50 = vpop.permute.xlu0 %1315  ;;  %v1302_v53 = vpop.permute.xlu1 %1301 }
 0x44b   : > { %v1326_v22 = vsel %vm1319_vm5, %v1300_v15, %v1316_v50  ;;  %v1334_v36 = vsel %vm1319_vm5, %v1316_v50, %v1300_v15 }
 0x44c   : > { %v2951_v48 = vadd.f32 %v1326_v22, %v2818_v51  ;;  %v2962_v42 = vadd.f32 %v1334_v36, %v2829_v40 }
 0x44e   : > { %1378 = vrot.lane.b32.xlu0 %v2948_v30, %s2093_s20  ;;  %1364 = vrot.lane.b32.xlu1 %v2951_v48, %s2093_s20  ;;  %v1318_v55 = vpop.permute.xlu0 %1317 }
 0x44f   : > { %v1327_v57 = vsel %vm1319_vm5, %v1302_v53, %v1318_v55  ;;  %v1335_v1 = vsel %vm1319_vm5, %v1318_v55, %v1302_v53 }
 0x450   : > { %v2965_v51 = vadd.f32 %v1327_v57, %v2832_v49  ;;  %v2977_v54 = vadd.f32 %v1335_v1, %v2841_v59 }
 0x452   : > { %1380 = vrot.lane.b32.xlu0 %v2962_v42, %s2093_s20  ;;  %1366 = vrot.lane.b32.xlu1 %v2965_v51, %s2093_s20 }
 0x454   : > { %v1507_v40 = vpop.permute.xlu1 %1506  ;;  %v1509_v0 = vpop.permute.xlu0 %1508 }
 0x455   : > { %v1510_v49 = vsel %vm1319_vm5, %v1507_v40, %v1509_v0  ;;  %v1511_v59 = vsel %vm1319_vm5, %v1509_v0, %v1507_v40 }
 0x456   : > { %1382 = vrot.lane.b32.xlu0 %v2977_v54, %s2093_s20  ;;  %1550 = vperm.xlu1 %1997, %v1532_v61   ;;  %v2987_v46 = vadd.f32 %v1510_v49, %v2850_v60  ;;  %v2997_v63 = vadd.f32 %v1511_v59, %v2853_v3  ;;  %v1611_v60 = vld [vmem:[%s3309_s7 + $0x8] sm:$0xff] }
 0x457   : > { %v1535_v3 = vld [vmem:[%s3308_s6 + $0x28] sm:$0xff] }
 0x45a   : > { %1555 = vperm.xlu0 %1996, %v1533_v62   ;;  %1514 = vrot.lane.b32.xlu1 %v2987_v46, %s2093_s20 }
 0x45e   : > { %1516 = vrot.lane.b32.xlu0 %v2997_v63, %s2093_s20  ;;  %1620 = vperm.xlu1 %1997, %v1610_v12   ;;  %s2099_s20 = smov 32  }
 0x461   : > { %v3028_v31 = vpop.permute.xlu1 %1540  ;;  %v3030_v33 = vpop.permute.xlu0 %1545 }
 0x462   : > { %1625 = vperm.xlu0 %1996, %v1611_v60   ;;  %1560 = vperm.xlu1 %1997, %v1534_v2  }
 0x466   : > { %1630 = vperm.xlu0 %1996, %v1612_v5   ;;  %1565 = vperm.xlu1 %1997, %v1535_v3  }
 0x46a   : > { %1635 = vperm.xlu0 %1996, %v1613_v4   ;;  %1570 = vperm.xlu1 %1997, %v1536_v9  }
 0x46e   : > { %1640 = vperm.xlu0 %1996, %v1614_v11   ;;  %1575 = vperm.xlu1 %1997, %v1537_v24   ;;  %v1616_v11 = vld [vmem:[%s3309_s7 + $0x30] sm:$0xff] }
 0x472   : > { %1645 = vperm.xlu0 %1996, %v1615_v17  }
 0x4a8   : > { %v1353_v14 = vpop.permute.xlu1 %1352 }
 0x4ac   : > { %v1369_v34 = vpop.permute.xlu1 %1368  ;;  %v1355_v19 = vpop.permute.xlu0 %1354 }
 0x4ad   : > { %v1385_v35 = vsel %vm1384_vm6, %v1353_v14, %v1369_v34  ;;  %v1393_v27 = vsel %vm1384_vm6, %v1369_v34, %v1353_v14 }
 0x4ae   : > { %v3036_v23 = vadd.f32 %v1385_v35, %v2869_v6  ;;  %v3045_v41 = vadd.f32 %v1393_v27, %v2878_v10 }
 0x4b0   : > { %v1357_v37 = vpop.permute.xlu1 %1356  ;;  %1417 = vrot.lane.b32.xlu1 %v3036_v23, %s2094_s11  ;;  %v1371_v38 = vpop.permute.xlu0 %1370 }
 0x4b1   : > { %v1386_v39 = vsel %vm1384_vm6, %v1355_v19, %v1371_v38  ;;  %v1394_v6 = vsel %vm1384_vm6, %v1371_v38, %v1355_v19 }
 0x4b2   : > { %v3048_v44 = vadd.f32 %v1386_v39, %v2881_v13  ;;  %v3059_v10 = vadd.f32 %v1394_v6, %v2892_v18 }
 0x4b4   : > { %v1359_v25 = vpop.permute.xlu1 %1358  ;;  %1433 = vrot.lane.b32.xlu1 %v3045_v41, %s2094_s11  ;;  %1419 = vrot.lane.b32.xlu0 %v3048_v44, %s2094_s11  ;;  %v1373_v15 = vpop.permute.xlu0 %1372 }
 0x4b5   : > { %v1395_v47 = vsel %vm1384_vm6, %v1373_v15, %v1357_v37  ;;  %v1387_v50 = vsel %vm1384_vm6, %v1357_v37, %v1373_v15  ;;  %v1700_v37 = vld [vmem:[%s3306_s4 + $0x1] sm:$0x1] }
 0x4b6   : > { %v3062_v13 = vadd.f32 %v1395_v47, %v2906_v28  ;;  %v3073_v18 = vadd.f32 %v1387_v50, %v2895_v26 }
 0x4b8   : > { %v1361_v22 = vpop.permute.xlu1 %1360  ;;  %1435 = vrot.lane.b32.xlu0 %v3059_v10, %s2094_s11  ;;  %1437 = vrot.lane.b32.xlu1 %v3062_v13, %s2094_s11  ;;  %v1375_v36 = vpop.permute.xlu0 %1374 }
 0x4b9   : > { %v1388_v53 = vsel %vm1384_vm6, %v1359_v25, %v1375_v36  ;;  %v1396_v55 = vsel %vm1384_vm6, %v1375_v36, %v1359_v25 }
 0x4ba   : > { %v3076_v28 = vadd.f32 %v1388_v53, %v2909_v32  ;;  %v3087_v26 = vadd.f32 %v1396_v55, %v2920_v21 }
 0x4bc   : > { %v1363_v57 = vpop.permute.xlu1 %1362  ;;  %1421 = vrot.lane.b32.xlu0 %v3073_v18, %s2094_s11  ;;  %1423 = vrot.lane.b32.xlu1 %v3076_v28, %s2094_s11  ;;  %v1377_v1 = vpop.permute.xlu0 %1376 }
 0x4bd   : > { %v1389_v61 = vsel %vm1384_vm6, %v1361_v22, %v1377_v1  ;;  %v1397_v40 = vsel %vm1384_vm6, %v1377_v1, %v1361_v22 }
 0x4be   : > { %v3090_v32 = vadd.f32 %v1389_v61, %v2923_v29  ;;  %v3101_v62 = vadd.f32 %v1397_v40, %v2934_v45 }
 0x4c0   : > { %1439 = vrot.lane.b32.xlu0 %v3087_v26, %s2094_s11  ;;  %1425 = vrot.lane.b32.xlu1 %v3090_v32, %s2094_s11  ;;  %v1379_v0 = vpop.permute.xlu0 %1378  ;;  %v1365_v21 = vpop.permute.xlu1 %1364 }
 0x4c1   : > { %v1390_v49 = vsel %vm1384_vm6, %v1363_v57, %v1379_v0  ;;  %v1398_v59 = vsel %vm1384_vm6, %v1379_v0, %v1363_v57 }
 0x4c2   : > { %v3104_v29 = vadd.f32 %v1390_v49, %v2937_v16  ;;  %v3115_v45 = vadd.f32 %v1398_v59, %v2948_v30 }
 0x4c4   : > { %1441 = vrot.lane.b32.xlu0 %v3101_v62, %s2094_s11  ;;  %1427 = vrot.lane.b32.xlu1 %v3104_v29, %s2094_s11  ;;  %v1381_v12 = vpop.permute.xlu0 %1380  ;;  %v1367_v5 = vpop.permute.xlu1 %1366 }
 0x4c5   : > { %v1391_v60 = vsel %vm1384_vm6, %v1365_v21, %v1381_v12  ;;  %v1399_v16 = vsel %vm1384_vm6, %v1381_v12, %v1365_v21 }
 0x4c6   : > { %v3118_v2 = vadd.f32 %v1391_v60, %v2951_v48  ;;  %v3129_v30 = vadd.f32 %v1399_v16, %v2962_v42  ;;  %v1617_v42 = vld [vmem:[%s3309_s7 + $0x38] sm:$0xff] }
 0x4c8   : > { %1443 = vrot.lane.b32.xlu0 %v3115_v45, %s2094_s11  ;;  %1429 = vrot.lane.b32.xlu1 %v3118_v2, %s2094_s11  ;;  %v1383_v3 = vpop.permute.xlu0 %1382 }
 0x4c9   : > { %v1392_v4 = vsel %vm1384_vm6, %v1367_v5, %v1383_v3  ;;  %v1400_v9 = vsel %vm1384_vm6, %v1383_v3, %v1367_v5 }
 0x4ca   : > { %v3132_v48 = vadd.f32 %v1392_v4, %v2965_v51  ;;  %v3144_v24 = vadd.f32 %v1400_v9, %v2977_v54 }
 0x4cc   : > { %1445 = vrot.lane.b32.xlu0 %v3129_v30, %s2094_s11  ;;  %1431 = vrot.lane.b32.xlu1 %v3132_v48, %s2094_s11 }
 0x4d0   : > { %1447 = vrot.lane.b32.xlu0 %v3144_v24, %s2094_s11  ;;  %1650 = vperm.xlu1 %1997, %v1616_v11  }
 0x4d1   : > { %v1551_v51 = vpop.permute.xlu1 %1550 }
 0x4d4   : > { %1655 = vperm.xlu0 %1996, %v1617_v42  }
 0x4d5   : > { %v3151_v17 = vpop.permute.xlu0 %1555  ;;  %v1515_v14 = vpop.permute.xlu1 %1514 }
 0x4d9   : > { %v1517_v34 = vpop.permute.xlu0 %1516  ;;  %v3170_v38 = vpop.permute.xlu1 %1620 }
 0x4da   : > { %v1518_v19 = vsel %vm1384_vm6, %v1515_v14, %v1517_v34  ;;  %v1519_v54 = vsel %vm1384_vm6, %v1517_v34, %v1515_v14 }
 0x4db   : > { %v3158_v35 = vadd.f32 %v1518_v19, %v2987_v46  ;;  %v3161_v27 = vadd.f32 %v1519_v54, %v2997_v63 }
 0x4dd   : > { %1524 = vrot.lane.b32.xlu0 %v3161_v27, %s2094_s11  ;;  %1522 = vrot.lane.b32.xlu1 %v3158_v35, %s2094_s11  ;;  %v3172_v39 = vpop.permute.xlu0 %1625  ;;  %v3174_v46 = vpop.permute.xlu1 %1560 }
 0x4e1   : > { %1703 = vperm.xlu1 %1997, %v1700_v37   ;;  %v3176_v6 = vpop.permute.xlu0 %1630  ;;  %v3178_v63 = vpop.permute.xlu1 %1565 }
 0x4e5   : > { %v3180_v25 = vpop.permute.xlu0 %1635  ;;  %v3182_v15 = vpop.permute.xlu1 %1570 }
 0x4e9   : > { %v3184_v47 = vpop.permute.xlu0 %1640  ;;  %v3186_v50 = vpop.permute.xlu1 %1575 }
 0x4ed   : > { %v3188_v22 = vpop.permute.xlu0 %1645 }
 0x522   : > { %v1418_v36 = vpop.permute.xlu1 %1417 }
 0x526   : > { %v1434_v53 = vpop.permute.xlu1 %1433  ;;  %v1420_v55 = vpop.permute.xlu0 %1419 }
 0x527   : > { %v1450_v12 = vsel %vm1449_vm7, %v1418_v36, %v1434_v53  ;;  %v1458_v60 = vsel %vm1449_vm7, %v1434_v53, %v1418_v36 }
 0x528   : > { %v1466_v9 = vadd.f32 %v1450_v12, %v3036_v23  ;;  %v1467_v11 = vadd.f32 %v1458_v60, %v3045_v41 }
 0x52a   : > { %v1438_v57 = vpop.permute.xlu1 %1437  ;;  %v1436_v1 = vpop.permute.xlu0 %1435 }
 0x52b   : > { %v1451_v0 = vsel %vm1449_vm7, %v1420_v55, %v1436_v1  ;;  %v1459_v49 = vsel %vm1449_vm7, %v1436_v1, %v1420_v55  ;;  %v1578_v55 = vadd.f32 %v3028_v31, %v1466_v9 }
 0x52c   : > { %v1468_v16 = vadd.f32 %v1451_v0, %v3048_v44  ;;  %v1469_v5 = vadd.f32 %v1459_v49, %v3059_v10 }
 0x52d   : > { %v1594_v12 = vmax.f32 %v1578_v55, 0.0 }
 0x52e   : > { %v1424_v61 = vpop.permute.xlu1 %1423  ;;  %v1422_v40 = vpop.permute.xlu0 %1421  ;;  %v1580_v54 = vadd.f32 %v3030_v33, %v1468_v16  ;;  %v1581_v37 = vadd.f32 %v3030_v33, %v1469_v5 }
 0x52f   : > { %v1452_v3 = vsel %vm1449_vm7, %v1422_v40, %v1438_v57  ;;  %v1460_v4 = vsel %vm1449_vm7, %v1438_v57, %v1422_v40 }
 0x530   : > { %v1470_v10 = vadd.f32 %v1452_v3, %v3073_v18  ;;  %v1471_v19 = vadd.f32 %v1460_v4, %v3062_v13  ;;  %v1579_v18 = vadd.f32 %v3028_v31, %v1467_v11 }
 0x532   : > { %v1426_v21 = vpop.permute.xlu1 %1425  ;;  %v1440_v59 = vpop.permute.xlu0 %1439  ;;  %v1582_v13 = vadd.f32 %v1551_v51, %v1470_v10  ;;  %v1583_v1 = vadd.f32 %v1551_v51, %v1471_v19  ;;  %v1595_v60 = vmax.f32 %v1579_v18, 0.0 }
 0x533   : > { %v1453_v42 = vsel %vm1449_vm7, %v1424_v61, %v1440_v59  ;;  %v1461_v14 = vsel %vm1449_vm7, %v1440_v59, %v1424_v61  ;;  %v1597_v61 = vmax.f32 %v1581_v37, 0.0 }
 0x534   : > { %v1472_v23 = vadd.f32 %v1453_v42, %v3076_v28  ;;  %v1473_v41 = vadd.f32 %v1461_v14, %v3087_v26  ;;  %v1596_v26 = vmax.f32 %v1580_v54, 0.0  ;;  %v1598_v5 = vmax.f32 %v1582_v13, 0.0 }
 0x535   : > { %v1599_v3 = vmax.f32 %v1583_v1, 0.0  ;;  %v1661_v9 = vmul.f32 %v3172_v39, %v1597_v61 }
 0x536   : > { %v1428_v34 = vpop.permute.xlu1 %1427  ;;  %v1442_v44 = vpop.permute.xlu0 %1441  ;;  %v1585_v31 = vadd.f32 %v3151_v17, %v1473_v41  ;;  %v1662_v37 = vmul.f32 %v3176_v6, %v1598_v5 }
 0x537   : > { %v1454_v36 = vsel %vm1449_vm7, %v1426_v21, %v1442_v44  ;;  %v1462_v53 = vsel %vm1449_vm7, %v1442_v44, %v1426_v21  ;;  %v1584_v21 = vadd.f32 %v3151_v17, %v1472_v23  ;;  %v1659_v44 = vmul.f32 %v3170_v38, %v1595_v60 }
 0x538   : > { %v1474_v40 = vadd.f32 %v1454_v36, %v3090_v32  ;;  %v1475_v0 = vadd.f32 %v1462_v53, %v3101_v62  ;;  %v1660_v62 = vmul.f32 %v3172_v39, %v1596_v26  ;;  %v1601_v11 = vmax.f32 %v1585_v31, 0.0 }
 0x539   : > { %v1687_v36 = vadd.f32 %v1661_v9, %v1659_v44 }
 0x53a   : > { %v1444_v57 = vpop.permute.xlu0 %1443  ;;  %v1430_v49 = vpop.permute.xlu1 %1429  ;;  %v1586_v17 = vadd.f32 %v3174_v46, %v1474_v40 }
 0x53b   : > { %v1455_v33 = vsel %vm1449_vm7, %v1428_v34, %v1444_v57  ;;  %v1463_v28 = vsel %vm1449_vm7, %v1444_v57, %v1428_v34  ;;  %v1658_v34 = vmul.f32 %v3170_v38, %v1594_v12 }
 0x53c   : > { %v1476_v59 = vadd.f32 %v1455_v33, %v3104_v29  ;;  %v1477_v51 = vadd.f32 %v1463_v28, %v3115_v45  ;;  %v1587_v29 = vadd.f32 %v3174_v46, %v1475_v0  ;;  %v1600_v45 = vmax.f32 %v1584_v21, 0.0 }
 0x53d   : > { %v1663_v46 = vmul.f32 %v3176_v6, %v1599_v3  ;;  %v1674_v41 = vadd.f32 %v1660_v62, %v1658_v34  ;;  %v1602_v53 = vmax.f32 %v1586_v17, 0.0 }
 0x53e   : > { %v1446_v16 = vpop.permute.xlu0 %1445  ;;  %v1588_v42 = vadd.f32 %v3178_v63, %v1476_v59  ;;  %v1589_v14 = vadd.f32 %v3178_v63, %v1477_v51  ;;  %v1432_v10 = vpop.permute.xlu1 %1431  ;;  %v1603_v38 = vmax.f32 %v1587_v29, 0.0  ;;  %v1664_v55 = vmul.f32 %v3180_v25, %v1600_v45 }
 0x53f   : > { %v1456_v4 = vsel %vm1449_vm7, %v1430_v49, %v1446_v16  ;;  %v1464_v32 = vsel %vm1449_vm7, %v1446_v16, %v1430_v49  ;;  %v1675_v33 = vadd.f32 %v1674_v41, %v1662_v37  ;;  %v1688_v28 = vadd.f32 %v1687_v36, %v1663_v46 }
 0x540   : > { %v1478_v19 = vadd.f32 %v1456_v4, %v3118_v2  ;;  %v1479_v54 = vadd.f32 %v1464_v32, %v3129_v30  ;;  %v1665_v2 = vmul.f32 %v3180_v25, %v1601_v11  ;;  %v1604_v30 = vmax.f32 %v1588_v42, 0.0 }
 0x541   : > { %v1605_v18 = vmax.f32 %v1589_v14, 0.0  ;;  %v1666_v26 = vmul.f32 %v3184_v47, %v1602_v53  ;;  %v1667_v61 = vmul.f32 %v3184_v47, %v1603_v38  ;;  %v1676_v40 = vadd.f32 %v1675_v33, %v1664_v55 }
 0x542   : > { %v1448_v39 = vpop.permute.xlu0 %1447  ;;  %v1590_v13 = vadd.f32 %v3182_v15, %v1478_v19  ;;  %v1591_v1 = vadd.f32 %v3182_v15, %v1479_v54  ;;  %v1689_v0 = vadd.f32 %v1688_v28, %v1665_v2  ;;  %v1668_v25 = vmul.f32 %v3188_v22, %v1604_v30 }
 0x543   : > { %v1457_v23 = vsel %vm1449_vm7, %v1432_v10, %v1448_v39  ;;  %v1465_v63 = vsel %vm1449_vm7, %v1448_v39, %v1432_v10  ;;  %v1669_v49 = vmul.f32 %v3188_v22, %v1605_v18  ;;  %v1677_v12 = vadd.f32 %v1676_v40, %v1666_v26 }
 0x544   : > { %v1480_v57 = vadd.f32 %v1457_v23, %v3132_v48  ;;  %v1481_v6 = vadd.f32 %v1465_v63, %v3144_v24  ;;  %v1606_v21 = vmax.f32 %v1590_v13, 0.0  ;;  %v1607_v48 = vmax.f32 %v1591_v1, 0.0 }
 0x545   : > { %v1690_v60 = vadd.f32 %v1689_v0, %v1667_v61  ;;  %v1678_v16 = vadd.f32 %v1677_v12, %v1668_v25 }
 0x546   : > { %v1592_v24 = vadd.f32 %v3186_v50, %v1480_v57  ;;  %v1593_v31 = vadd.f32 %v3186_v50, %v1481_v6 }
 0x547   : > { %v1691_v5 = vadd.f32 %v1690_v60, %v1669_v49 }
 0x548   : > { %v1608_v47 = vmax.f32 %v1592_v24, 0.0  ;;  %v1609_v3 = vmax.f32 %v1593_v31, 0.0 }
 0x54b   : > { %v1651_v59 = vpop.permute.xlu1 %1650 }
 0x54c   : > { %v1670_v15 = vmul.f32 %v1651_v59, %v1606_v21  ;;  %v1671_v51 = vmul.f32 %v1651_v59, %v1607_v48 }
 0x54e   : > { %v1679_v32 = vadd.f32 %v1678_v16, %v1670_v15  ;;  %v1692_v62 = vadd.f32 %v1691_v5, %v1671_v51 }
 0x54f   : > { %v1656_v4 = vpop.permute.xlu0 %1655  ;;  %v1523_v45 = vpop.permute.xlu1 %1522 }
 0x550   : > { %v1672_v9 = vmul.f32 %v1656_v4, %v1608_v47  ;;  %v1673_v22 = vmul.f32 %v1656_v4, %v1609_v3 }
 0x552   : > { %v1680_v17 = vadd.f32 %v1679_v32, %v1672_v9  ;;  %v1693_v29 = vadd.f32 %v1692_v62, %v1673_v22 }
 0x553   : > { %v1525_v11 = vpop.permute.xlu0 %1524 }
 0x554   : > { %v1681_v42 = vrot.slane %v1680_v17, 4  ;;  %v1694_v50 = vrot.slane %v1693_v29, 4  ;;  %v1526_v14 = vsel %vm1449_vm7, %v1523_v45, %v1525_v11  ;;  %v1527_v34 = vsel %vm1449_vm7, %v1525_v11, %v1523_v45 }
 0x555   : > { %v1528_v44 = vadd.f32 %v1526_v14, %v3158_v35  ;;  %v1529_v10 = vadd.f32 %v1527_v34, %v3161_v27  ;;  %v1716_v35 = vld [vmem:[%s3310_s8] sm:$0x3]  ;;  %v1724_v27 = vsub.s32 1, %v2357_v52 }
 0x556   : > { %v1682_v19 = vadd.f32 %v1681_v42, %v1680_v17  ;;  %v1695_v54 = vadd.f32 %v1694_v50, %v1693_v29  ;;  %v1721_v1 = vrot.slane %v1716_v35, %v2360_v56 }
 0x557   : > { %v1710_v39 = vmax.f32 %v1528_v44, 1e-30  ;;  %v1711_v37 = vmax.f32 %v1529_v10, 1e-30  ;;  %v1725_v28 = vrot.slane %v1716_v35, %v1724_v27 }
 0x558   : > { %v1683_v46 = vrot.slane %v1682_v19, 2  ;;  %v1696_v23 = vrot.slane %v1695_v54, 2 }
 0x559   : > { %2075 = vrcp.f32 %v1710_v39 }
 0x55a   : > { %2077 = vrcp.f32 %v1711_v37  ;;  %v1684_v63 = vadd.f32 %v1683_v46, %v1682_v19  ;;  %v1697_v41 = vadd.f32 %v1696_v23, %v1695_v54 }
 0x55c   : > { %v1685_v36 = vrot.slane %v1684_v63, 1  ;;  %v1698_v53 = vrot.slane %v1697_v41, 1  ;;  %v1704_v2 = vpop.permute.xlu1 %1703 }
 0x55e   : > { %v1686_v38 = vadd.f32 %v1685_v36, %v1684_v63  ;;  %v1699_v55 = vadd.f32 %v1698_v53, %v1697_v41 }
 0x560   : > { %v1706_v30 = vadd.f32 %v1704_v2, %v1686_v38  ;;  %v1707_v18 = vadd.f32 %v1704_v2, %v1699_v55 }
 0x562   : > { %v1708_v57 = vmax.f32 %v1706_v30, 0.0  ;;  %v1709_v6 = vmax.f32 %v1707_v18, 0.0 }
 0x564   : > { %v1810_v13 = vcombine.low %v1708_v57, %v1709_v6 }
 0x566   : > { %v2076_v33 = vpop.eup %2075  ;;  %v1817_v26 = vrot.slane %v1810_v13, %v2364_v58 }
 0x567   : > { %v2078_v61 = vpop.eup %2077  ;;  %v1714_v40 = vmul.f32 %v2076_v33, %v1708_v57 }
 0x568   : > { %v1715_v0 = vmul.f32 %v2078_v61, %v1709_v6  ;;  %v1824_v25 = vrot.slane %v1817_v26, %v2364_v58 }
 0x569   : > { %v1728_v49 = vmul.f32 %v1721_v1, %v1714_v40 }
 0x56a   : > { %v1729_v21 = vmul.f32 %v1725_v28, %v1715_v0  ;;  %1969 = vst.msk [vmem:[%s2388_s25 + $0x1] ss:$4 sm:$0x3] %vm2391_vm1, %v1824_v25 }
 0x56b   : > { %1730 = vrot.lane.b32.xlu0 %v1728_v49, %s2095_s21 }
 0x56c   : > { %1732 = vrot.lane.b32.xlu1 %v1729_v21, %s2095_s21 }
 0x5dd   : > { %v1731_v52 = vpop.permute.xlu0 %1730 }
 0x5de   : > { %v1733_v56 = vpop.permute.xlu1 %1732 }
 0x5df   : > { %v1735_v48 = vsel %vm1734_vm8, %v1731_v52, %v1733_v56  ;;  %v1736_v24 = vsel %vm1734_vm8, %v1733_v56, %v1731_v52 }
 0x5e0   : > { %v1737_v31 = vadd.f32 %v1736_v24, %v1728_v49  ;;  %v1738_v59 = vadd.f32 %v1735_v48, %v1729_v21 }
 0x5e2   : > { %1739 = vrot.lane.b32.xlu0 %v1737_v31, %s2096_s22  ;;  %1741 = vrot.lane.b32.xlu1 %v1738_v59, %s2096_s22 }
 0x654   : > { %v1740_v15 = vpop.permute.xlu0 %1739  ;;  %v1742_v51 = vpop.permute.xlu1 %1741 }
 0x655   : > { %v1744_v12 = vsel %vm1743_vm9, %v1740_v15, %v1742_v51  ;;  %v1745_v60 = vsel %vm1743_vm9, %v1742_v51, %v1740_v15 }
 0x656   : > { %v1746_v16 = vadd.f32 %v1745_v60, %v1737_v31  ;;  %v1747_v5 = vadd.f32 %v1744_v12, %v1738_v59 }
 0x658   : > { %1748 = vrot.lane.b32.xlu0 %v1746_v16, %s2097_s23  ;;  %1750 = vrot.lane.b32.xlu1 %v1747_v5, %s2097_s23 }
 0x6ca   : > { %v1749_v47 = vpop.permute.xlu0 %1748  ;;  %v1751_v3 = vpop.permute.xlu1 %1750 }
 0x6cb   : > { %v1753_v4 = vsel %vm1752_vm10, %v1749_v47, %v1751_v3  ;;  %v1754_v32 = vsel %vm1752_vm10, %v1751_v3, %v1749_v47 }
 0x6cc   : > { %v1755_v62 = vadd.f32 %v1754_v32, %v1746_v16  ;;  %v1756_v9 = vadd.f32 %v1753_v4, %v1747_v5 }
 0x6ce   : > { %1757 = vrot.lane.b32.xlu0 %v1755_v62, %s2098_s24  ;;  %1759 = vrot.lane.b32.xlu1 %v1756_v9, %s2098_s24 }
 0x740   : > { %v1758_v22 = vpop.permute.xlu0 %1757  ;;  %v1760_v17 = vpop.permute.xlu1 %1759 }
 0x741   : > { %v1762_v29 = vsel %vm1761_vm11, %v1758_v22, %v1760_v17  ;;  %v1763_v45 = vsel %vm1761_vm11, %v1760_v17, %v1758_v22 }
 0x742   : > { %v1764_v11 = vadd.f32 %v1763_v45, %v1755_v62  ;;  %v1765_v42 = vadd.f32 %v1762_v29, %v1756_v9 }
 0x744   : > { %1766 = vrot.lane.b32.xlu0 %v1764_v11, %s2099_s20  ;;  %1768 = vrot.lane.b32.xlu1 %v1765_v42, %s2099_s20 }
 0x7b6   : > { %v1767_v50 = vpop.permute.xlu0 %1766  ;;  %v1769_v14 = vpop.permute.xlu1 %1768 }
 0x7b7   : > { %v1771_v34 = vsel %vm1770_vm12, %v1767_v50, %v1769_v14  ;;  %v1772_v44 = vsel %vm1770_vm12, %v1769_v14, %v1767_v50 }
 0x7b8   : > { %v1773_v10 = vadd.f32 %v1772_v44, %v1764_v11  ;;  %v1774_v19 = vadd.f32 %v1771_v34, %v1765_v42 }
 0x7ba   : > { %1775 = vrot.lane.b32.xlu0 %v1773_v10, %s2094_s11  ;;  %1777 = vrot.lane.b32.xlu1 %v1774_v19, %s2094_s11 }
 0x82c   : > { %v1776_v54 = vpop.permute.xlu0 %1775  ;;  %v1778_v39 = vpop.permute.xlu1 %1777 }
 0x82d   : > { %v1779_v37 = vsel %vm1449_vm7, %v1776_v54, %v1778_v39  ;;  %v1780_v46 = vsel %vm1449_vm7, %v1778_v39, %v1776_v54 }
 0x82e   : > { %v1781_v23 = vadd.f32 %v1780_v46, %v1773_v10  ;;  %v1782_v63 = vadd.f32 %v1779_v37, %v1774_v19 }
 0x830   : > { %v1783_v41 = vmul.f32 %v2472_v7, %v1781_v23  ;;  %v1784_v36 = vmul.f32 %v2476_v20, %v1782_v63 }
 0x832   : > { %v1830_v53 = vcombine.low %v1783_v41, %v1784_v36 }
 0x834   : > { %v1837_v38 = vrot.slane %v1830_v53, %v2364_v58 }
 0x836   : > { %v1844_v55 = vrot.slane %v1837_v38, %v2364_v58 }
 0x838   : > { %1970 = vst.msk [vmem:[%s2388_s25 + $0x2] ss:$4 sm:$0x3] %vm2391_vm1, %v1844_v55 }
 0x839 PF: > { %s19_s30 = sadd.s32 1, %s2085_s30  }
 0x83a   : > { %p16_p4 = scmp.ge.s32.totalorder %s19_s30, 4  }
 0x83c   :  { %18 = sbr.rel (!%p16_p4) target bundleno = 1 (0x1), region = 88 }

</bundles_post_ra>
